<compile_context>
chip_gen: v7x
topology: tpu7x:2x2x1
jax: 0.10.0
libtpu: 0.0.40
codegen_flags: <defaults>
</compile_context>

<pallas_src>
import jax
import jax.numpy as jnp
from jax.experimental import pallas as pl
from jax.experimental.pallas import tpu as pltpu

LANE = 128          # vreg lane width; every kernel tensor is kept lane-dense
BATCH_TILE = 128    # rows per grid step (fills MXU; use 256 on v6e/v7x if desired)
NEG = -1e9          # f32 bias for padded softmax columns -> exp underflows to exactly 0


def _round_up(n, m):
    return ((n + m - 1) // m) * m


# ----------------------------------------------------------------------------- kernel
def _softmax_lanes(logits):
    m = jnp.max(logits, axis=1, keepdims=True)
    e = jnp.exp(logits - m)
    s = jnp.sum(e, axis=1, keepdims=True)
    return e * pl.reciprocal(s, approx=True)


def granger_amoe_kernel(x_ref, w_exp_ref, b_exp_ref, w_h_ref, b_h_ref,
                        sum_sel_ref, ue_sum_ref, expand_sel_ref,
                        w_f1_ref, b_f1_ref, w_f2_ref, b_f2_ref, out_ref):
    CE = w_h_ref.shape[0]                    # C * E  (multiple of 128 in this config)
    C = out_ref.shape[1] // LANE - 3
    bf16 = jnp.bfloat16

    def bdot(a_f32, w_ref):                  # bf16 MXU operands, f32 accumulation
        return jnp.dot(a_f32.astype(bf16), w_ref[...],
                       preferred_element_type=jnp.float32)

    # 1) all expert embeddings in one block-diagonal bf16 matmul -> h (BT, C*E), f32
    x = x_ref[...]                                                       # bf16 tile
    h = jnp.maximum(jnp.dot(x, w_exp_ref[...],
                            preferred_element_type=jnp.float32) + b_exp_ref[...], 0.0)

    # 2) ONE wide bf16 matmul from h: [u | t | paux_c | paux_i_0..C-1] logits, f32
    fused = bdot(h, w_h_ref) + b_h_ref[...]                              # (BT, NF)
    u_all = jnp.maximum(fused[:, 0:CE], 0.0)                             # u-net outputs
    t = jnp.maximum(fused[:, CE:2 * CE], 0.0)                            # transformed embs

    # 3) attention weights: per-channel sum via 0/1 selector matmul, softmax over lanes
    logits_w = bdot(u_all, sum_sel_ref) + ue_sum_ref[...]                # pads = NEG
    w_pad = _softmax_lanes(logits_w)                                     # pads = 0

    # 4) weighted transform + fcn head
    w_lanes = bdot(w_pad, expand_sel_ref)                                # weight per lane
    weighted = t * w_lanes
    hidden = jnp.maximum(bdot(weighted, w_f1_ref) + b_f1_ref[...], 0.0)
    y_att = bdot(hidden, w_f2_ref) + b_f2_ref[...]                       # (BT, LANE)

    # 5) single lane-dense output slab: [yaux_i_0..C-1 | yaux_c | y_att | weights]
    base = 2 * CE + LANE
    for j in range(C):                                                   # tiny static unroll
        out_ref[:, j * LANE:(j + 1) * LANE] = _softmax_lanes(
            fused[:, base + j * LANE: base + (j + 1) * LANE])
    out_ref[:, C * LANE:(C + 1) * LANE] = _softmax_lanes(fused[:, 2 * CE:2 * CE + LANE])
    out_ref[:, (C + 1) * LANE:(C + 2) * LANE] = y_att
    out_ref[:, (C + 2) * LANE:(C + 3) * LANE] = w_pad


# ------------------------------------------------------------------ one-time weight prep
def prepare_kernel_params(params, C, HW, E, NCLS):
    """Packs PyTorch-style parameters into fused, lane-dense bf16 kernel weights.

    Called once, hoisted out of the per-forward path."""
    CE = C * E
    H1 = CE // 2
    H1P = _round_up(H1, LANE)
    NF = 2 * CE + (C + 1) * LANE           # fused wide-matmul output width (lane multiple)
    f32, bf16 = jnp.float32, jnp.bfloat16

    # --- expert embedders: block-diagonal (C*HW, C*E)
    w_exp_bd = jnp.zeros((C * HW, CE), f32)
    for c in range(C):
        w_exp_bd = w_exp_bd.at[c * HW:(c + 1) * HW, c * E:(c + 1) * E].set(params['w_exp'][c])
    b_exp = params['b_exp'].reshape(1, CE).astype(f32)

    # --- fused wide matmul from h: [w_u | w_t(block-diag) | w_pc | w_pi_0..C-1]
    w_h = jnp.zeros((CE, NF), f32)
    b_h = jnp.zeros((1, NF), f32)
    # u-nets: concat along output lanes
    w_u_cat = jnp.concatenate([params['w_u'][c] for c in range(C)], axis=1)      # (CE, CE)
    w_h = w_h.at[:, 0:CE].set(w_u_cat)
    b_h = b_h.at[0, 0:CE].set(params['b_u'].reshape(CE))
    # transform nets: block-diagonal
    for c in range(C):
        w_h = w_h.at[c * E:(c + 1) * E, CE + c * E:CE + (c + 1) * E].set(params['w_t'][c])
    b_h = b_h.at[0, CE:2 * CE].set(params['b_t'].reshape(CE))
    # paux_c: NEG bias on padded lanes -> softmax prob exactly 0
    c0 = 2 * CE
    w_h = w_h.at[:, c0:c0 + NCLS].set(params['w_pc'])
    b_h = b_h.at[0, c0:c0 + LANE].set(
        jnp.full((LANE,), NEG, f32).at[:NCLS].set(params['b_pc'][0]))
    # paux_i: leave-one-out via zero rows for the excluded channel block
    base = 2 * CE + LANE
    for j in range(C):
        col = base + j * LANE
        for c in range(C):
            if c == j:
                continue
            pos = c if c < j else c - 1
            w_h = w_h.at[c * E:(c + 1) * E, col:col + NCLS].set(
                params['w_pi'][j, pos * E:(pos + 1) * E, :])
        b_h = b_h.at[0, col:col + LANE].set(
            jnp.full((LANE,), NEG, f32).at[:NCLS].set(params['b_pi'][j, 0]))

    # --- selector matmuls replacing reshape/reduce/broadcast
    chan_of = jnp.arange(CE) // E                                                # in [0, C)
    sum_sel = (chan_of[:, None] == jnp.arange(LANE)[None, :]).astype(f32)        # (CE, LANE)
    expand_sel = (jnp.arange(LANE)[:, None] == chan_of[None, :]).astype(f32)     # (LANE, CE)
    ue_sum = jnp.full((1, LANE), NEG, f32).at[0, :C].set(jnp.sum(params['ue'], axis=1))

    # --- fcn head: row-permute f1 so channel-major weighted matches PyTorch (e*C + c) order
    perm = jnp.array([e * C + c for c in range(C) for e in range(E)], dtype=jnp.int32)
    w_f1 = jnp.zeros((CE, H1P), f32).at[:, :H1].set(params['w_f1'][perm])
    b_f1 = jnp.zeros((1, H1P), f32).at[0, :H1].set(params['b_f1'][0])
    w_f2 = jnp.zeros((H1P, LANE), f32).at[:H1, :NCLS].set(params['w_f2'])
    b_f2 = jnp.zeros((1, LANE), f32).at[0, :NCLS].set(params['b_f2'][0])

    return dict(
        w_exp_bd=w_exp_bd.astype(bf16), b_exp=b_exp,
        w_h=w_h.astype(bf16), b_h=b_h,
        sum_sel=sum_sel.astype(bf16), ue_sum=ue_sum, expand_sel=expand_sel.astype(bf16),
        w_f1=w_f1.astype(bf16), b_f1=b_f1, w_f2=w_f2.astype(bf16), b_f2=b_f2,
        C=C, HW=HW, E=E, NCLS=NCLS, H1P=H1P, NF=NF,
    )


# ----------------------------------------------------------------------------- wrapper
def granger_amoe_forward(x, kp):
    C, HW, E, NCLS, H1P, NF = kp['C'], kp['HW'], kp['E'], kp['NCLS'], kp['H1P'], kp['NF']
    CE = C * E
    B = x.shape[0]
    OUTW = (C + 3) * LANE

    # Batch tile: 128 rows fills the MXU on every generation; clamp for tiny batches.
    # Must stay a multiple of 16 (bf16 sublane packing).  For large B on v7x this
    # yields >= 2 grid steps so both TensorCores are used ("parallel" axis).
    BT = min(BATCH_TILE, _round_up(max(B, 1), 16))
    B_pad = _round_up(B, BT)
    num_tiles = B_pad // BT

    x_flat = x.reshape(B, C * HW).astype(jnp.float32)
    if B_pad != B:
        x_flat = jnp.pad(x_flat, ((0, B_pad - B), (0, 0)))
    x_flat = x_flat.astype(jnp.bfloat16)           # halves HBM traffic; native MXU operand

    weight_inputs = (kp['w_exp_bd'], kp['b_exp'], kp['w_h'], kp['b_h'],
                     kp['sum_sel'], kp['ue_sum'], kp['expand_sel'],
                     kp['w_f1'], kp['b_f1'], kp['w_f2'], kp['b_f2'])

    def full_spec(a):                               # weights stay VMEM-resident, index (0,0)
        return pl.BlockSpec(a.shape, lambda i: (0, 0))

    in_specs = [pl.BlockSpec((BT, C * HW), lambda i: (i, 0))] + \
               [full_spec(a) for a in weight_inputs]
    out_specs = pl.BlockSpec((BT, OUTW), lambda i: (i, 0))
    out_shape = jax.ShapeDtypeStruct((B_pad, OUTW), jnp.float32)

    flops = 2 * B_pad * (C * HW * CE + CE * NF + CE * LANE + LANE * CE
                         + CE * H1P + H1P * LANE)
    n_weight_bytes = sum(int(a.size) * a.dtype.itemsize for a in weight_inputs)
    cost = pl.CostEstimate(
        flops=int(flops),
        transcendentals=int(B_pad * LANE * (C + 2)),
        bytes_accessed=int(2 * x_flat.size + n_weight_bytes + 4 * B_pad * OUTW),
    )

    out = pl.pallas_call(
        granger_amoe_kernel,
        out_shape=out_shape,
        grid_spec=pltpu.PrefetchScalarGridSpec(
            num_scalar_prefetch=0,
            grid=(num_tiles,),
            in_specs=in_specs,
            out_specs=out_specs,
        ),
        compiler_params=pltpu.CompilerParams(dimension_semantics=("parallel",)),
        cost_estimate=cost,
    )(x_flat, *weight_inputs)

    yaux_i = [out[:B, j * LANE:j * LANE + NCLS] for j in range(C)]
    yaux_c = out[:B, C * LANE:C * LANE + NCLS]
    y_att = out[:B, (C + 1) * LANE:(C + 1) * LANE + NCLS]
    weights = out[:B, (C + 2) * LANE:(C + 2) * LANE + C]
    return yaux_i, yaux_c, y_att, weights


# ------------------------------------------------------------------------- pure-JAX ref
def reference_forward(x, params):
    """Pure-JAX replica of the exact PyTorch forward semantics (eval mode, f32)."""
    B, C, H, W = x.shape
    E = params['ue'].shape[1]
    xf = x.reshape(B, C, H * W)
    embs = [jax.nn.relu(xf[:, c] @ params['w_exp'][c] + params['b_exp'][c])
            for c in range(C)]
    h_stack = jnp.stack(embs, axis=1)                       # (B, C, E)
    h = h_stack.reshape(B, -1)                              # (B, C*E)
    u = jnp.stack([jax.nn.relu(h @ params['w_u'][c] + params['b_u'][c])
                   for c in range(C)], axis=1)              # (B, C, E)
    transf = jnp.stack([jax.nn.relu(embs[c] @ params['w_t'][c] + params['b_t'][c])
                        for c in range(C)], axis=1)         # (B, C, E)
    weights = jax.nn.softmax(jnp.sum(u + params['ue'][None], axis=2), axis=1)
    weighted = (jnp.transpose(transf, (0, 2, 1)) * weights[:, None, :]).reshape(B, -1)
    hid = jax.nn.relu(weighted @ params['w_f1'] + params['b_f1'])
    y_att = hid @ params['w_f2'] + params['b_f2']
    yaux_c = jax.nn.softmax(h @ params['w_pc'] + params['b_pc'], axis=1)
    yaux_i = []
    for j in range(C):
        hci = jnp.concatenate([embs[c] for c in range(C) if c != j], axis=1)
        yaux_i.append(jax.nn.softmax(hci @ params['w_pi'][j] + params['b_pi'][j], axis=1))
    return yaux_i, yaux_c, y_att, weights


def init_params(key, C, HW, E, NCLS):
    ks = jax.random.split(key, 15)

    def norm(k, shape, scale):
        return (scale * jax.random.normal(k, shape)).astype(jnp.float32)

    return dict(
        w_exp=norm(ks[0], (C, HW, E), 1.0 / (HW ** 0.5)),
        b_exp=norm(ks[1], (C, 1, E), 0.1),
        w_t=norm(ks[2], (C, E, E), 1.0 / (E ** 0.5)),
        b_t=norm(ks[3], (C, 1, E), 0.1),
        w_u=norm(ks[4], (C, C * E, E), 1.0 / ((C * E) ** 0.5)),
        b_u=norm(ks[5], (C, 1, E), 0.1),
        ue=norm(ks[6], (C, E), 1.0 / (E ** 0.5)),            # xavier-ish stand-in
        w_f1=norm(ks[7], (C * E, C * E // 2), 1.0 / ((C * E) ** 0.5)),
        b_f1=norm(ks[8], (1, C * E // 2), 0.1),
        w_f2=norm(ks[9], (C * E // 2, NCLS), 1.0 / ((C * E // 2) ** 0.5)),
        b_f2=norm(ks[10], (1, NCLS), 0.1),
        w_pc=norm(ks[11], (C * E, NCLS), 1.0 / ((C * E) ** 0.5)),
        b_pc=norm(ks[12], (1, NCLS), 0.1),
        w_pi=norm(ks[13], (C, (C - 1) * E, NCLS), 1.0 / (((C - 1) * E) ** 0.5)),
        b_pi=norm(ks[14], (C, 1, NCLS), 0.1),
    )


if __name__ == "__main__":
    B, C, H, W = 2, 4, 16, 16      # input_dim = (4, 16, 16), nchannels = 4
    E, NCLS = 32, 5                # emb_dim = 32, nclasses = 5
    key = jax.random.PRNGKey(0)
    kx, kp_key = jax.random.split(key)
    x = jax.random.normal(kx, (B, C, H, W), dtype=jnp.float32)
    params = init_params(kp_key, C, H * W, E, NCLS)

    # one-time weight packing (hoisted out of the forward path)
    kparams = prepare_kernel_params(params, C, H * W, E, NCLS)
    kparams = jax.tree_util.tree_map(
        lambda v: jax.block_until_ready(v) if isinstance(v, jax.Array) else v, kparams)

    yaux_i, yaux_c, y_att, weights = granger_amoe_forward(x, kparams)
    jax.block_until_ready((yaux_i, yaux_c, y_att, weights))

    # sanity check against pure-JAX f32 reference of the PyTorch forward
    # (tolerances account for bf16 MXU operands + approx reciprocal in softmax)
    r_yaux_i, r_yaux_c, r_y_att, r_weights = reference_forward(x, params)
    RTOL, ATOL = 5e-2, 3e-2
    ok = True
    for a, b in zip(yaux_i, r_yaux_i):
        ok &= bool(jnp.allclose(a, b, rtol=RTOL, atol=ATOL))
    ok &= bool(jnp.allclose(yaux_c, r_yaux_c, rtol=RTOL, atol=ATOL))
    ok &= bool(jnp.allclose(y_att, r_y_att, rtol=RTOL, atol=ATOL))
    ok &= bool(jnp.allclose(weights, r_weights, rtol=RTOL, atol=ATOL))
    assert ok, "Pallas kernel output mismatch vs reference"
    print("KERNEL_OK")
</pallas_src>

<mosaic_0001>
module attributes {stable_mosaic.version = 11 : i64} {
  func.func @granger_amoe_kernel(%arg0: i32, %arg1: memref<16x1024xbf16, #tpu.memory_space<vmem>>, %arg2: memref<1024x128xbf16, #tpu.memory_space<vmem>>, %arg3: memref<1x128xf32, #tpu.memory_space<vmem>>, %arg4: memref<128x896xbf16, #tpu.memory_space<vmem>>, %arg5: memref<1x896xf32, #tpu.memory_space<vmem>>, %arg6: memref<128x128xbf16, #tpu.memory_space<vmem>>, %arg7: memref<1x128xf32, #tpu.memory_space<vmem>>, %arg8: memref<128x128xbf16, #tpu.memory_space<vmem>>, %arg9: memref<128x128xbf16, #tpu.memory_space<vmem>>, %arg10: memref<1x128xf32, #tpu.memory_space<vmem>>, %arg11: memref<128x128xbf16, #tpu.memory_space<vmem>>, %arg12: memref<1x128xf32, #tpu.memory_space<vmem>>, %arg13: memref<16x896xf32, #tpu.memory_space<vmem>>) attributes {dimension_semantics = [#tpu.dimension_semantics<parallel>], iteration_bounds = array<i64: 1>, scalar_prefetch = 0 : i64, scratch_operands = 0 : i64, tpu.core_type = #tpu.core_type<tc>, window_params = [{transform_indices = @transform_0, window_bounds = array<i64: 16, 1024>}, {pipeline_mode = #tpu.pipeline_mode<synchronous>, transform_indices = @transform_1, window_bounds = array<i64: 1024, 128>}, {pipeline_mode = #tpu.pipeline_mode<synchronous>, transform_indices = @transform_2, window_bounds = array<i64: 1, 128>}, {pipeline_mode = #tpu.pipeline_mode<synchronous>, transform_indices = @transform_3, window_bounds = array<i64: 128, 896>}, {pipeline_mode = #tpu.pipeline_mode<synchronous>, transform_indices = @transform_4, window_bounds = array<i64: 1, 896>}, {pipeline_mode = #tpu.pipeline_mode<synchronous>, transform_indices = @transform_5, window_bounds = array<i64: 128, 128>}, {pipeline_mode = #tpu.pipeline_mode<synchronous>, transform_indices = @transform_6, window_bounds = array<i64: 1, 128>}, {pipeline_mode = #tpu.pipeline_mode<synchronous>, transform_indices = @transform_7, window_bounds = array<i64: 128, 128>}, {pipeline_mode = #tpu.pipeline_mode<synchronous>, transform_indices = @transform_8, window_bounds = array<i64: 128, 128>}, {pipeline_mode = #tpu.pipeline_mode<synchronous>, transform_indices = @transform_9, window_bounds = array<i64: 1, 128>}, {pipeline_mode = #tpu.pipeline_mode<synchronous>, transform_indices = @transform_10, window_bounds = array<i64: 128, 128>}, {pipeline_mode = #tpu.pipeline_mode<synchronous>, transform_indices = @transform_11, window_bounds = array<i64: 1, 128>}, {transform_indices = @transform_12, window_bounds = array<i64: 16, 896>}]} {
    %c0 = arith.constant 0 : index
    %c0_0 = arith.constant 0 : index
    %0 = vector.load %arg1[%c0, %c0_0] : memref<16x1024xbf16, #tpu.memory_space<vmem>>, vector<16x1024xbf16>
    %c0_1 = arith.constant 0 : index
    %c0_2 = arith.constant 0 : index
    %1 = vector.load %arg2[%c0_1, %c0_2] : memref<1024x128xbf16, #tpu.memory_space<vmem>>, vector<1024x128xbf16>
    %cst = arith.constant dense<0.000000e+00> : vector<16x128xf32>
    %2 = tpu.matmul %0, %1, %cst {dimension_numbers = #tpu.dot_dimension_numbers<[1], [0], [0], [1], [0, 0, 1, 1], [], []>} : vector<16x1024xbf16>, vector<1024x128xbf16>, vector<16x128xf32> -> vector<16x128xf32>
    %c0_3 = arith.constant 0 : index
    %c0_4 = arith.constant 0 : index
    %3 = vector.load %arg3[%c0_3, %c0_4] : memref<1x128xf32, #tpu.memory_space<vmem>>, vector<1x128xf32>
    %4 = vector.broadcast %3 : vector<1x128xf32> to vector<16x128xf32>
    %5 = arith.addf %2, %4 : vector<16x128xf32>
    %cst_5 = arith.constant 0.000000e+00 : f32
    %6 = vector.broadcast %cst_5 : f32 to vector<16x128xf32>
    %7 = arith.maximumf %5, %6 : vector<16x128xf32>
    %8 = arith.truncf %7 : vector<16x128xf32> to vector<16x128xbf16>
    %c0_6 = arith.constant 0 : index
    %c0_7 = arith.constant 0 : index
    %9 = vector.load %arg4[%c0_6, %c0_7] : memref<128x896xbf16, #tpu.memory_space<vmem>>, vector<128x896xbf16>
    %cst_8 = arith.constant dense<0.000000e+00> : vector<16x896xf32>
    %10 = tpu.matmul %8, %9, %cst_8 {dimension_numbers = #tpu.dot_dimension_numbers<[1], [0], [0], [1], [0, 0, 1, 1], [], []>} : vector<16x128xbf16>, vector<128x896xbf16>, vector<16x896xf32> -> vector<16x896xf32>
    %c0_9 = arith.constant 0 : index
    %c0_10 = arith.constant 0 : index
    %11 = vector.load %arg5[%c0_9, %c0_10] : memref<1x896xf32, #tpu.memory_space<vmem>>, vector<1x896xf32>
    %12 = vector.broadcast %11 : vector<1x896xf32> to vector<16x896xf32>
    %13 = arith.addf %10, %12 : vector<16x896xf32>
    %14 = vector.extract_strided_slice %13 {offsets = [0, 0], sizes = [16, 128], strides = [1, 1]} : vector<16x896xf32> to vector<16x128xf32>
    %cst_11 = arith.constant 0.000000e+00 : f32
    %15 = vector.broadcast %cst_11 : f32 to vector<16x128xf32>
    %16 = arith.maximumf %14, %15 : vector<16x128xf32>
    %17 = vector.extract_strided_slice %13 {offsets = [0, 128], sizes = [16, 128], strides = [1, 1]} : vector<16x896xf32> to vector<16x128xf32>
    %cst_12 = arith.constant 0.000000e+00 : f32
    %18 = vector.broadcast %cst_12 : f32 to vector<16x128xf32>
    %19 = arith.maximumf %17, %18 : vector<16x128xf32>
    %20 = arith.truncf %16 : vector<16x128xf32> to vector<16x128xbf16>
    %c0_13 = arith.constant 0 : index
    %c0_14 = arith.constant 0 : index
    %21 = vector.load %arg6[%c0_13, %c0_14] : memref<128x128xbf16, #tpu.memory_space<vmem>>, vector<128x128xbf16>
    %cst_15 = arith.constant dense<0.000000e+00> : vector<16x128xf32>
    %22 = tpu.matmul %20, %21, %cst_15 {dimension_numbers = #tpu.dot_dimension_numbers<[1], [0], [0], [1], [0, 0, 1, 1], [], []>} : vector<16x128xbf16>, vector<128x128xbf16>, vector<16x128xf32> -> vector<16x128xf32>
    %c0_16 = arith.constant 0 : index
    %c0_17 = arith.constant 0 : index
    %23 = vector.load %arg7[%c0_16, %c0_17] : memref<1x128xf32, #tpu.memory_space<vmem>>, vector<1x128xf32>
    %24 = vector.broadcast %23 : vector<1x128xf32> to vector<16x128xf32>
    %25 = arith.addf %22, %24 : vector<16x128xf32>
    %cst_18 = arith.constant dense<0xFF800000> : vector<16xf32>
    %26 = vector.multi_reduction <maximumf>, %25, %cst_18 [1] : vector<16x128xf32> to vector<16xf32>
    %27 = vector.shape_cast %26 : vector<16xf32> to vector<16x1xf32>
    %28 = vector.broadcast %27 : vector<16x1xf32> to vector<16x128xf32>
    %29 = arith.subf %25, %28 : vector<16x128xf32>
    %30 = math.exp %29 : vector<16x128xf32>
    %cst_19 = arith.constant dense<0.000000e+00> : vector<16xf32>
    %31 = vector.multi_reduction <add>, %30, %cst_19 [1] : vector<16x128xf32> to vector<16xf32>
    %32 = vector.shape_cast %31 : vector<16xf32> to vector<16x1xf32>
    %33 = tpu.reciprocal %32 {approx = true} : vector<16x1xf32> -> vector<16x1xf32>
    %34 = vector.broadcast %33 : vector<16x1xf32> to vector<16x128xf32>
    %35 = arith.mulf %30, %34 : vector<16x128xf32>
    %36 = arith.truncf %35 : vector<16x128xf32> to vector<16x128xbf16>
    %c0_20 = arith.constant 0 : index
    %c0_21 = arith.constant 0 : index
    %37 = vector.load %arg8[%c0_20, %c0_21] : memref<128x128xbf16, #tpu.memory_space<vmem>>, vector<128x128xbf16>
    %cst_22 = arith.constant dense<0.000000e+00> : vector<16x128xf32>
    %38 = tpu.matmul %36, %37, %cst_22 {dimension_numbers = #tpu.dot_dimension_numbers<[1], [0], [0], [1], [0, 0, 1, 1], [], []>} : vector<16x128xbf16>, vector<128x128xbf16>, vector<16x128xf32> -> vector<16x128xf32>
    %39 = arith.mulf %19, %38 : vector<16x128xf32>
    %40 = arith.truncf %39 : vector<16x128xf32> to vector<16x128xbf16>
    %c0_23 = arith.constant 0 : index
    %c0_24 = arith.constant 0 : index
    %41 = vector.load %arg9[%c0_23, %c0_24] : memref<128x128xbf16, #tpu.memory_space<vmem>>, vector<128x128xbf16>
    %cst_25 = arith.constant dense<0.000000e+00> : vector<16x128xf32>
    %42 = tpu.matmul %40, %41, %cst_25 {dimension_numbers = #tpu.dot_dimension_numbers<[1], [0], [0], [1], [0, 0, 1, 1], [], []>} : vector<16x128xbf16>, vector<128x128xbf16>, vector<16x128xf32> -> vector<16x128xf32>
    %c0_26 = arith.constant 0 : index
    %c0_27 = arith.constant 0 : index
    %43 = vector.load %arg10[%c0_26, %c0_27] : memref<1x128xf32, #tpu.memory_space<vmem>>, vector<1x128xf32>
    %44 = vector.broadcast %43 : vector<1x128xf32> to vector<16x128xf32>
    %45 = arith.addf %42, %44 : vector<16x128xf32>
    %cst_28 = arith.constant 0.000000e+00 : f32
    %46 = vector.broadcast %cst_28 : f32 to vector<16x128xf32>
    %47 = arith.maximumf %45, %46 : vector<16x128xf32>
    %48 = arith.truncf %47 : vector<16x128xf32> to vector<16x128xbf16>
    %c0_29 = arith.constant 0 : index
    %c0_30 = arith.constant 0 : index
    %49 = vector.load %arg11[%c0_29, %c0_30] : memref<128x128xbf16, #tpu.memory_space<vmem>>, vector<128x128xbf16>
    %cst_31 = arith.constant dense<0.000000e+00> : vector<16x128xf32>
    %50 = tpu.matmul %48, %49, %cst_31 {dimension_numbers = #tpu.dot_dimension_numbers<[1], [0], [0], [1], [0, 0, 1, 1], [], []>} : vector<16x128xbf16>, vector<128x128xbf16>, vector<16x128xf32> -> vector<16x128xf32>
    %c0_32 = arith.constant 0 : index
    %c0_33 = arith.constant 0 : index
    %51 = vector.load %arg12[%c0_32, %c0_33] : memref<1x128xf32, #tpu.memory_space<vmem>>, vector<1x128xf32>
    %52 = vector.broadcast %51 : vector<1x128xf32> to vector<16x128xf32>
    %53 = arith.addf %50, %52 : vector<16x128xf32>
    %54 = vector.extract_strided_slice %13 {offsets = [0, 384], sizes = [16, 128], strides = [1, 1]} : vector<16x896xf32> to vector<16x128xf32>
    %cst_34 = arith.constant dense<0xFF800000> : vector<16xf32>
    %55 = vector.multi_reduction <maximumf>, %54, %cst_34 [1] : vector<16x128xf32> to vector<16xf32>
    %56 = vector.shape_cast %55 : vector<16xf32> to vector<16x1xf32>
    %57 = vector.broadcast %56 : vector<16x1xf32> to vector<16x128xf32>
    %58 = arith.subf %54, %57 : vector<16x128xf32>
    %59 = math.exp %58 : vector<16x128xf32>
    %cst_35 = arith.constant dense<0.000000e+00> : vector<16xf32>
    %60 = vector.multi_reduction <add>, %59, %cst_35 [1] : vector<16x128xf32> to vector<16xf32>
    %61 = vector.shape_cast %60 : vector<16xf32> to vector<16x1xf32>
    %62 = tpu.reciprocal %61 {approx = true} : vector<16x1xf32> -> vector<16x1xf32>
    %63 = vector.broadcast %62 : vector<16x1xf32> to vector<16x128xf32>
    %64 = arith.mulf %59, %63 : vector<16x128xf32>
    %c0_36 = arith.constant 0 : index
    %c0_37 = arith.constant 0 : index
    %65 = vector.load %arg13[%c0_36, %c0_37] : memref<16x896xf32, #tpu.memory_space<vmem>>, vector<16x128xf32>
    tpu.vector_store %arg13[%c0_36, %c0_37], %64 {strides = array<i32>} : memref<16x896xf32, #tpu.memory_space<vmem>>, vector<16x128xf32>,
    %66 = vector.extract_strided_slice %13 {offsets = [0, 512], sizes = [16, 128], strides = [1, 1]} : vector<16x896xf32> to vector<16x128xf32>
    %cst_38 = arith.constant dense<0xFF800000> : vector<16xf32>
    %67 = vector.multi_reduction <maximumf>, %66, %cst_38 [1] : vector<16x128xf32> to vector<16xf32>
    %68 = vector.shape_cast %67 : vector<16xf32> to vector<16x1xf32>
    %69 = vector.broadcast %68 : vector<16x1xf32> to vector<16x128xf32>
    %70 = arith.subf %66, %69 : vector<16x128xf32>
    %71 = math.exp %70 : vector<16x128xf32>
    %cst_39 = arith.constant dense<0.000000e+00> : vector<16xf32>
    %72 = vector.multi_reduction <add>, %71, %cst_39 [1] : vector<16x128xf32> to vector<16xf32>
    %73 = vector.shape_cast %72 : vector<16xf32> to vector<16x1xf32>
    %74 = tpu.reciprocal %73 {approx = true} : vector<16x1xf32> -> vector<16x1xf32>
    %75 = vector.broadcast %74 : vector<16x1xf32> to vector<16x128xf32>
    %76 = arith.mulf %71, %75 : vector<16x128xf32>
    %c0_40 = arith.constant 0 : index
    %c128 = arith.constant 128 : index
    %77 = vector.load %arg13[%c0_40, %c128] : memref<16x896xf32, #tpu.memory_space<vmem>>, vector<16x128xf32>
    tpu.vector_store %arg13[%c0_40, %c128], %76 {strides = array<i32>} : memref<16x896xf32, #tpu.memory_space<vmem>>, vector<16x128xf32>,
    %78 = vector.extract_strided_slice %13 {offsets = [0, 640], sizes = [16, 128], strides = [1, 1]} : vector<16x896xf32> to vector<16x128xf32>
    %cst_41 = arith.constant dense<0xFF800000> : vector<16xf32>
    %79 = vector.multi_reduction <maximumf>, %78, %cst_41 [1] : vector<16x128xf32> to vector<16xf32>
    %80 = vector.shape_cast %79 : vector<16xf32> to vector<16x1xf32>
    %81 = vector.broadcast %80 : vector<16x1xf32> to vector<16x128xf32>
    %82 = arith.subf %78, %81 : vector<16x128xf32>
    %83 = math.exp %82 : vector<16x128xf32>
    %cst_42 = arith.constant dense<0.000000e+00> : vector<16xf32>
    %84 = vector.multi_reduction <add>, %83, %cst_42 [1] : vector<16x128xf32> to vector<16xf32>
    %85 = vector.shape_cast %84 : vector<16xf32> to vector<16x1xf32>
    %86 = tpu.reciprocal %85 {approx = true} : vector<16x1xf32> -> vector<16x1xf32>
    %87 = vector.broadcast %86 : vector<16x1xf32> to vector<16x128xf32>
    %88 = arith.mulf %83, %87 : vector<16x128xf32>
    %c0_43 = arith.constant 0 : index
    %c256 = arith.constant 256 : index
    %89 = vector.load %arg13[%c0_43, %c256] : memref<16x896xf32, #tpu.memory_space<vmem>>, vector<16x128xf32>
    tpu.vector_store %arg13[%c0_43, %c256], %88 {strides = array<i32>} : memref<16x896xf32, #tpu.memory_space<vmem>>, vector<16x128xf32>,
    %90 = vector.extract_strided_slice %13 {offsets = [0, 768], sizes = [16, 128], strides = [1, 1]} : vector<16x896xf32> to vector<16x128xf32>
    %cst_44 = arith.constant dense<0xFF800000> : vector<16xf32>
    %91 = vector.multi_reduction <maximumf>, %90, %cst_44 [1] : vector<16x128xf32> to vector<16xf32>
    %92 = vector.shape_cast %91 : vector<16xf32> to vector<16x1xf32>
    %93 = vector.broadcast %92 : vector<16x1xf32> to vector<16x128xf32>
    %94 = arith.subf %90, %93 : vector<16x128xf32>
    %95 = math.exp %94 : vector<16x128xf32>
    %cst_45 = arith.constant dense<0.000000e+00> : vector<16xf32>
    %96 = vector.multi_reduction <add>, %95, %cst_45 [1] : vector<16x128xf32> to vector<16xf32>
    %97 = vector.shape_cast %96 : vector<16xf32> to vector<16x1xf32>
    %98 = tpu.reciprocal %97 {approx = true} : vector<16x1xf32> -> vector<16x1xf32>
    %99 = vector.broadcast %98 : vector<16x1xf32> to vector<16x128xf32>
    %100 = arith.mulf %95, %99 : vector<16x128xf32>
    %c0_46 = arith.constant 0 : index
    %c384 = arith.constant 384 : index
    %101 = vector.load %arg13[%c0_46, %c384] : memref<16x896xf32, #tpu.memory_space<vmem>>, vector<16x128xf32>
    tpu.vector_store %arg13[%c0_46, %c384], %100 {strides = array<i32>} : memref<16x896xf32, #tpu.memory_space<vmem>>, vector<16x128xf32>,
    %102 = vector.extract_strided_slice %13 {offsets = [0, 256], sizes = [16, 128], strides = [1, 1]} : vector<16x896xf32> to vector<16x128xf32>
    %cst_47 = arith.constant dense<0xFF800000> : vector<16xf32>
    %103 = vector.multi_reduction <maximumf>, %102, %cst_47 [1] : vector<16x128xf32> to vector<16xf32>
    %104 = vector.shape_cast %103 : vector<16xf32> to vector<16x1xf32>
    %105 = vector.broadcast %104 : vector<16x1xf32> to vector<16x128xf32>
    %106 = arith.subf %102, %105 : vector<16x128xf32>
    %107 = math.exp %106 : vector<16x128xf32>
    %cst_48 = arith.constant dense<0.000000e+00> : vector<16xf32>
    %108 = vector.multi_reduction <add>, %107, %cst_48 [1] : vector<16x128xf32> to vector<16xf32>
    %109 = vector.shape_cast %108 : vector<16xf32> to vector<16x1xf32>
    %110 = tpu.reciprocal %109 {approx = true} : vector<16x1xf32> -> vector<16x1xf32>
    %111 = vector.broadcast %110 : vector<16x1xf32> to vector<16x128xf32>
    %112 = arith.mulf %107, %111 : vector<16x128xf32>
    %c0_49 = arith.constant 0 : index
    %c512 = arith.constant 512 : index
    %113 = vector.load %arg13[%c0_49, %c512] : memref<16x896xf32, #tpu.memory_space<vmem>>, vector<16x128xf32>
    tpu.vector_store %arg13[%c0_49, %c512], %112 {strides = array<i32>} : memref<16x896xf32, #tpu.memory_space<vmem>>, vector<16x128xf32>,
    %c0_50 = arith.constant 0 : index
    %c640 = arith.constant 640 : index
    %114 = vector.load %arg13[%c0_50, %c640] : memref<16x896xf32, #tpu.memory_space<vmem>>, vector<16x128xf32>
    tpu.vector_store %arg13[%c0_50, %c640], %53 {strides = array<i32>} : memref<16x896xf32, #tpu.memory_space<vmem>>, vector<16x128xf32>,
    %c0_51 = arith.constant 0 : index
    %c768 = arith.constant 768 : index
    %115 = vector.load %arg13[%c0_51, %c768] : memref<16x896xf32, #tpu.memory_space<vmem>>, vector<16x128xf32>
    tpu.vector_store %arg13[%c0_51, %c768], %35 {strides = array<i32>} : memref<16x896xf32, #tpu.memory_space<vmem>>, vector<16x128xf32>,
    return
  }
  func.func @transform_0(%arg0: i32) -> (i32, i32) {
    %c0_i32 = arith.constant 0 : i32
    %c0_i32_0 = arith.constant 0 : i32
    return %arg0, %c0_i32 : i32, i32
  }
  func.func @transform_1(%arg0: i32) -> (i32, i32) {
    %c0_i32 = arith.constant 0 : i32
    %c0_i32_0 = arith.constant 0 : i32
    %c0_i32_1 = arith.constant 0 : i32
    return %c0_i32, %c0_i32_0 : i32, i32
  }
  func.func @transform_2(%arg0: i32) -> (i32, i32) {
    %c0_i32 = arith.constant 0 : i32
    %c0_i32_0 = arith.constant 0 : i32
    %c0_i32_1 = arith.constant 0 : i32
    return %c0_i32, %c0_i32_0 : i32, i32
  }
  func.func @transform_3(%arg0: i32) -> (i32, i32) {
    %c0_i32 = arith.constant 0 : i32
    %c0_i32_0 = arith.constant 0 : i32
    %c0_i32_1 = arith.constant 0 : i32
    return %c0_i32, %c0_i32_0 : i32, i32
  }
  func.func @transform_4(%arg0: i32) -> (i32, i32) {
    %c0_i32 = arith.constant 0 : i32
    %c0_i32_0 = arith.constant 0 : i32
    %c0_i32_1 = arith.constant 0 : i32
    return %c0_i32, %c0_i32_0 : i32, i32
  }
  func.func @transform_5(%arg0: i32) -> (i32, i32) {
    %c0_i32 = arith.constant 0 : i32
    %c0_i32_0 = arith.constant 0 : i32
    %c0_i32_1 = arith.constant 0 : i32
    return %c0_i32, %c0_i32_0 : i32, i32
  }
  func.func @transform_6(%arg0: i32) -> (i32, i32) {
    %c0_i32 = arith.constant 0 : i32
    %c0_i32_0 = arith.constant 0 : i32
    %c0_i32_1 = arith.constant 0 : i32
    return %c0_i32, %c0_i32_0 : i32, i32
  }
  func.func @transform_7(%arg0: i32) -> (i32, i32) {
    %c0_i32 = arith.constant 0 : i32
    %c0_i32_0 = arith.constant 0 : i32
    %c0_i32_1 = arith.constant 0 : i32
    return %c0_i32, %c0_i32_0 : i32, i32
  }
  func.func @transform_8(%arg0: i32) -> (i32, i32) {
    %c0_i32 = arith.constant 0 : i32
    %c0_i32_0 = arith.constant 0 : i32
    %c0_i32_1 = arith.constant 0 : i32
    return %c0_i32, %c0_i32_0 : i32, i32
  }
  func.func @transform_9(%arg0: i32) -> (i32, i32) {
    %c0_i32 = arith.constant 0 : i32
    %c0_i32_0 = arith.constant 0 : i32
    %c0_i32_1 = arith.constant 0 : i32
    return %c0_i32, %c0_i32_0 : i32, i32
  }
  func.func @transform_10(%arg0: i32) -> (i32, i32) {
    %c0_i32 = arith.constant 0 : i32
    %c0_i32_0 = arith.constant 0 : i32
    %c0_i32_1 = arith.constant 0 : i32
    return %c0_i32, %c0_i32_0 : i32, i32
  }
  func.func @transform_11(%arg0: i32) -> (i32, i32) {
    %c0_i32 = arith.constant 0 : i32
    %c0_i32_0 = arith.constant 0 : i32
    %c0_i32_1 = arith.constant 0 : i32
    return %c0_i32, %c0_i32_0 : i32, i32
  }
  func.func @transform_12(%arg0: i32) -> (i32, i32) {
    %c0_i32 = arith.constant 0 : i32
    %c0_i32_0 = arith.constant 0 : i32
    return %arg0, %c0_i32 : i32, i32
  }
}

</mosaic_0001>

<bundles_post_ra>
// kernel: tpu_custom_call.1
= control target key start
LH: loop header
LB: loop body
LE: loop exit
PB: predicated region body
PF: predicated region fallthrough
CT: control target
= control target key end

     0   :  { %17 = vsyncpa [#allocation3], 0  ;;  %s3200_s0 = inlined_call_operand.hbm [shape: bf16[16,1024], index: 0, kind: input, shape index: {}]   ;;  %s3201_s1 = inlined_call_operand.hbm [shape: bf16[1024,128], index: 1, kind: input, shape index: {}]   ;;  %s3202_s2 = inlined_call_operand.vmem [shape: f32[1,128], index: 2, kind: input, shape index: {}]   ;;  %s3203_s3 = inlined_call_operand.hbm [shape: bf16[128,896], index: 3, kind: input, shape index: {}]   ;;  %s3204_s4 = inlined_call_operand.vmem [shape: f32[1,896], index: 4, kind: input, shape index: {}]   ;;  %s3205_s5 = inlined_call_operand.hbm [shape: bf16[128,128], index: 5, kind: input, shape index: {}]   ;;  %s3206_s6 = inlined_call_operand.vmem [shape: f32[1,128], index: 6, kind: input, shape index: {}]   ;;  %s3207_s7 = inlined_call_operand.hbm [shape: bf16[128,128], index: 7, kind: input, shape index: {}]   ;;  %s3208_s8 = inlined_call_operand.hbm [shape: bf16[128,128], index: 8, kind: input, shape index: {}]   ;;  %s3209_s9 = inlined_call_operand.vmem [shape: f32[1,128], index: 9, kind: input, shape index: {}]   ;;  %s3210_s10 = inlined_call_operand.hbm [shape: bf16[128,128], index: 10, kind: input, shape index: {}]   ;;  %s3211_s11 = inlined_call_operand.vmem [shape: f32[1,128], index: 11, kind: input, shape index: {}]   ;;  %s3212_s12 = inlined_call_operand.hbm [shape: f32[16,896], index: 12, kind: output, shape index: {}]  }
   0x1   :  { %18 = vsyncpa [#allocation6], 0 }
   0x2   :  { %19 = vsyncpa [#allocation9], 0 }
   0x3   :  { %20 = vsyncpa [#allocation12], 0 }
   0x4   :  { %21 = vsyncpa [#allocation4], 0  ;;  %s2852_s21 = smov [#allocation5]   ;;  %s2666_s25 = scalar_lea.hbm %s3201_s1, 8192 }
   0x5   :  { %s39_s22 = sshll.u32 %s2852_s21, 4  ;;  %p2667_p0 = scmp.ne.s32.totalorder %s3201_s1, %s2666_s25  ;;  %s40_s22 = int_to_ptr.vmem [resolvable:$true] %s39_s22 }
   0x6   :  { %p2670_p1 = scmp.lt.u32.totalorder %s2666_s25, %s3201_s1 }
   0x8   :  { %p2672_p2 = pnand %p2670_p1, %p2667_p0 }
   0xa   :  { %2675 = shalt.err (!%p2672_p2)
}
   0xb   :  { %s2676_s30 = scalar_lea.vmem %s40_s22, 8192  ;;  %p2681_p4 = scmp.lt.s32.totalorder %s40_s22, %s40_s22 }
   0xc   :  { %p2677_p3 = scmp.ne.s32.totalorder %s40_s22, %s2676_s30  ;;  %p2682_p5 = scmp.lt.s32.totalorder %s2676_s30, %s2676_s30 }
   0xe   :  { %p2683_p6 = por %p2682_p5, %p2681_p4 }
  0x10   :  { %p2684_p7 = pnand %p2683_p6, %p2677_p3 }
  0x12   :  { %2687 = shalt.err (!%p2684_p7)
}
  0x13   :  { %s2853_s13 = smov 64   ;;  %s2854_s14 = smov 4  }
  0x14   :  { %45 = dma.hbm_to_vmem [thread:$0]  %s3201_s1, 8192, %s40_s22, [#allocation6], %s2853_s13, %s2853_s13, %s2854_s14  }
  0x15   :  { %s2855_s17 = smov [#allocation8]   ;;  %s2856_s19 = smov [#allocation11]  }
  0x16   :  { %s67_s18 = sshll.u32 %s2855_s17, 4  ;;  %s93_s20 = sshll.u32 %s2856_s19, 4  ;;  %s68_s18 = int_to_ptr.vmem [resolvable:$true] %s67_s18  ;;  %s94_s20 = int_to_ptr.vmem [resolvable:$true] %s93_s20 }
  0x17   :  { %s2688_s24 = scalar_lea.hbm %s3205_s5, 1024 }
  0x18   :  { %p2689_p8 = scmp.ne.s32.totalorder %s3205_s5, %s2688_s24  ;;  %p2692_p9 = scmp.lt.u32.totalorder %s2688_s24, %s3205_s5 }
  0x1a   :  { %p2694_p10 = pnand %p2692_p9, %p2689_p8 }
  0x1c   :  { %2697 = shalt.err (!%p2694_p10)
}
  0x1d   :  { %s2698_s1 = scalar_lea.vmem %s68_s18, 1024  ;;  %p2703_p12 = scmp.lt.s32.totalorder %s68_s18, %s68_s18 }
  0x1e   :  { %p2699_p11 = scmp.ne.s32.totalorder %s68_s18, %s2698_s1  ;;  %p2704_p13 = scmp.lt.s32.totalorder %s2698_s1, %s2698_s1 }
  0x20   :  { %p2705_p0 = por %p2704_p13, %p2703_p12 }
  0x22   :  { %p2706_p1 = pnand %p2705_p0, %p2699_p11 }
  0x24   :  { %2709 = shalt.err (!%p2706_p1)
}
  0x25   :  { %73 = dma.hbm_to_vmem [thread:$0]  %s3205_s5, 1024, %s68_s18, [#allocation9], %s2853_s13, %s2853_s13, %s2854_s14  }
  0x26   :  { %s2710_s16 = scalar_lea.hbm %s3208_s8, 1024 }
  0x27   :  { %p2711_p2 = scmp.ne.s32.totalorder %s3208_s8, %s2710_s16  ;;  %p2714_p3 = scmp.lt.u32.totalorder %s2710_s16, %s3208_s8 }
  0x29   :  { %p2716_p4 = pnand %p2714_p3, %p2711_p2 }
  0x2b   :  { %2719 = shalt.err (!%p2716_p4)
}
  0x2c   :  { %s2720_s24 = scalar_lea.vmem %s94_s20, 1024  ;;  %p2725_p6 = scmp.lt.s32.totalorder %s94_s20, %s94_s20 }
  0x2d   :  { %p2721_p5 = scmp.ne.s32.totalorder %s94_s20, %s2720_s24  ;;  %p2726_p7 = scmp.lt.s32.totalorder %s2720_s24, %s2720_s24 }
  0x2f   :  { %p2727_p8 = por %p2726_p7, %p2725_p6 }
  0x31   :  { %p2728_p9 = pnand %p2727_p8, %p2721_p5 }
  0x33   :  { %2731 = shalt.err (!%p2728_p9)
}
  0x34   :  { %99 = dma.hbm_to_vmem [thread:$0]  %s3208_s8, 1024, %s94_s20, [#allocation12], %s2853_s13, %s2853_s13, %s2854_s14  }
  0x35   :  { %s2857_s25 = smov [#allocation2]   ;;  %s2732_s1 = scalar_lea.hbm %s3200_s0, 1024 }
  0x36   :  { %s27_s26 = sshll.u32 %s2857_s25, 4  ;;  %p2733_p10 = scmp.ne.s32.totalorder %s3200_s0, %s2732_s1  ;;  %s28_s26 = int_to_ptr.vmem [resolvable:$true] %s27_s26 }
  0x37   :  { %p2736_p11 = scmp.lt.u32.totalorder %s2732_s1, %s3200_s0 }
  0x39   :  { %p2738_p12 = pnand %p2736_p11, %p2733_p10 }
  0x3b   :  { %2741 = shalt.err (!%p2738_p12)
}
  0x3c   :  { %s2742_s16 = scalar_lea.vmem %s28_s26, 1024  ;;  %p2747_p0 = scmp.lt.s32.totalorder %s28_s26, %s28_s26 }
  0x3d   :  { %p2743_p13 = scmp.ne.s32.totalorder %s28_s26, %s2742_s16  ;;  %p2748_p1 = scmp.lt.s32.totalorder %s2742_s16, %s2742_s16 }
  0x3f   :  { %p2749_p2 = por %p2748_p1, %p2747_p0 }
  0x41   :  { %p2750_p3 = pnand %p2749_p2, %p2743_p13 }
  0x43   :  { %2753 = shalt.err (!%p2750_p3)
}
  0x44   :  { %s2858_s8 = smov 512   ;;  %s2859_s20 = smov 32  }
  0x45   :  { %33 = dma.hbm_to_vmem [thread:$0]  %s3200_s0, 1024, %s28_s26, [#allocation3], %s2858_s8, %s2858_s8, %s2859_s20  }
  0x46   :  { %s2860_s21 = smov [#allocation7]   ;;  %s2754_s18 = scalar_lea.hbm %s3203_s3, 7168 }
  0x47   :  { %s53_s23 = sshll.u32 %s2860_s21, 4  ;;  %p2755_p4 = scmp.ne.s32.totalorder %s3203_s3, %s2754_s18  ;;  %s54_s23 = int_to_ptr.vmem [resolvable:$true] %s53_s23 }
  0x48   :  { %p2758_p5 = scmp.lt.u32.totalorder %s2754_s18, %s3203_s3 }
  0x4a   :  { %p2760_p6 = pnand %p2758_p5, %p2755_p4 }
  0x4c   :  { %2763 = shalt.err (!%p2760_p6)
}
  0x4d   :  { %s2764_s22 = scalar_lea.vmem %s54_s23, 7168  ;;  %p2769_p8 = scmp.lt.s32.totalorder %s54_s23, %s54_s23 }
  0x4e   :  { %p2765_p7 = scmp.ne.s32.totalorder %s54_s23, %s2764_s22  ;;  %p2770_p9 = scmp.lt.s32.totalorder %s2764_s22, %s2764_s22 }
  0x50   :  { %p2771_p10 = por %p2770_p9, %p2769_p8 }
  0x52   :  { %p2772_p11 = pnand %p2771_p10, %p2765_p7 }
  0x54   :  { %2775 = shalt.err (!%p2772_p11)
}
  0x55   :  { %s2861_s0 = smov 448   ;;  %s2862_s26 = smov 28  }
  0x56   :  { %59 = dma.hbm_to_vmem [thread:$0]  %s3203_s3, 7168, %s54_s23, [#allocation6], %s2861_s0, %s2861_s0, %s2862_s26  }
  0x57   :  { %s2863_s15 = smov [#allocation10]   ;;  %s2864_s8 = smov [#allocation13]  }
  0x58   :  { %s81_s16 = sshll.u32 %s2863_s15, 4  ;;  %s107_s20 = sshll.u32 %s2864_s8, 4  ;;  %s82_s16 = int_to_ptr.vmem [resolvable:$true] %s81_s16  ;;  %s108_s20 = int_to_ptr.vmem [resolvable:$true] %s107_s20 }
  0x59   :  { %s2776_s21 = scalar_lea.hbm %s3207_s7, 1024 }
  0x5a   :  { %p2777_p12 = scmp.ne.s32.totalorder %s3207_s7, %s2776_s21  ;;  %p2780_p13 = scmp.lt.u32.totalorder %s2776_s21, %s3207_s7 }
  0x5c   :  { %p2782_p0 = pnand %p2780_p13, %p2777_p12 }
  0x5e   :  { %2785 = shalt.err (!%p2782_p0)
}
  0x5f   :  { %s2786_s3 = scalar_lea.vmem %s82_s16, 1024  ;;  %p2791_p2 = scmp.lt.s32.totalorder %s82_s16, %s82_s16 }
  0x60   :  { %p2787_p1 = scmp.ne.s32.totalorder %s82_s16, %s2786_s3  ;;  %p2792_p3 = scmp.lt.s32.totalorder %s2786_s3, %s2786_s3 }
  0x62   :  { %p2793_p4 = por %p2792_p3, %p2791_p2 }
  0x64   :  { %p2794_p5 = pnand %p2793_p4, %p2787_p1 }
  0x66   :  { %2797 = shalt.err (!%p2794_p5)
}
  0x67   :  { %87 = dma.hbm_to_vmem [thread:$0]  %s3207_s7, 1024, %s82_s16, [#allocation9], %s2853_s13, %s2853_s13, %s2854_s14  }
  0x68   :  { %s2798_s22 = scalar_lea.hbm %s3210_s10, 1024 }
  0x69   :  { %p2799_p6 = scmp.ne.s32.totalorder %s3210_s10, %s2798_s22  ;;  %p2802_p7 = scmp.lt.u32.totalorder %s2798_s22, %s3210_s10 }
  0x6b   :  { %p2804_p8 = pnand %p2802_p7, %p2799_p6 }
  0x6d   :  { %2807 = shalt.err (!%p2804_p8)
}
  0x6e   :  { %s2808_s15 = scalar_lea.vmem %s108_s20, 1024  ;;  %p2813_p10 = scmp.lt.s32.totalorder %s108_s20, %s108_s20 }
  0x6f   :  { %p2809_p9 = scmp.ne.s32.totalorder %s108_s20, %s2808_s15  ;;  %p2814_p11 = scmp.lt.s32.totalorder %s2808_s15, %s2808_s15 }
  0x71   :  { %p2815_p12 = por %p2814_p11, %p2813_p10 }
  0x73   :  { %p2816_p13 = pnand %p2815_p12, %p2809_p9 }
  0x75   :  { %2819 = shalt.err (!%p2816_p13)
}
  0x76   :  { %113 = dma.hbm_to_vmem [thread:$0]  %s3210_s10, 1024, %s108_s20, [#allocation12], %s2853_s13, %s2853_s13, %s2854_s14  }
  0x77   :  { %2842 = dma.done.wait [#allocation3], 1024  }
  0x78   :  { %2843 = vsyncadd [#allocation3], 4294966272 }
  0x79   :  { %2844 = dma.done.wait [#allocation6], 15360  }
  0x7a   :  { %2845 = vsyncadd [#allocation6], 4294951936 }
  0x7b   :  { %2846 = dma.done.wait [#allocation9], 2048  }
  0x7c   :  { %2847 = vsyncadd [#allocation9], 4294965248 }
  0x7d   :  { %2848 = dma.done.wait [#allocation12], 2048  }
  0x7e   :  { %2849 = vsyncadd [#allocation12], 4294965248  ;;  %v2442_v0 = vld [vmem:[#allocation5 + $0x40] sm:$0xff]   ;;  %v2446_v4 = vld [vmem:[#allocation5 + $0x48] sm:$0xff]   ;;  %vm2867_vm0 = vmmov 0   ;;  %s2868_s21 = smov [#allocation14]  }
  0x7f   :  { %v2443_v1 = vld [vmem:[#allocation5 + $0xc0] sm:$0xff]   ;;  %2190 = vmatprep.subr.bf16.mxu0 %v2442_v0  ;;  %v2447_v5 = vld [vmem:[#allocation5 + $0xc8] sm:$0xff]   ;;  %v2450_v8 = vld [vmem:[#allocation5 + $0x50] sm:$0xff]   ;;  %s2011_s24 = sshll.u32 %s2868_s21, 4  ;;  %s2012_s24 = int_to_ptr.vmem [resolvable:$true] %s2011_s24 }
  0x80   :  { %v2444_v2 = vld [vmem:[#allocation5] sm:$0xff]   ;;  %2212 = vmatprep.subr.bf16.mxu1 %v2443_v1  ;;  %v2448_v6 = vld [vmem:[#allocation5 + $0x8] sm:$0xff]   ;;  %v2451_v9 = vld [vmem:[#allocation5 + $0xd0] sm:$0xff]   ;;  %p2825_p1 = scmp.lt.s32.totalorder %s2012_s24, %s2012_s24 }
  0x81   :  { %v2445_v3 = vld [vmem:[#allocation5 + $0x80] sm:$0xff]   ;;  %2191 = vmatpush3.bf16.msra.mxu0 %v2444_v2  ;;  %v2449_v7 = vld [vmem:[#allocation5 + $0x88] sm:$0xff]   ;;  %v2452_v10 = vld [vmem:[#allocation5 + $0x10] sm:$0xff]  }
  0x82   :  { %2213 = vmatpush3.bf16.msra.mxu1 %v2445_v3  ;;  %2192 = vmatprep.subr.bf16.mxu0 %v2446_v4  ;;  %v2453_v11 = vld [vmem:[#allocation5 + $0x90] sm:$0xff]   ;;  %v2454_v12 = vld [vmem:[#allocation5 + $0x58] sm:$0xff]   ;;  %v2458_v16 = vld [vmem:[#allocation5 + $0x60] sm:$0xff]  }
  0x83   :  { %2214 = vmatprep.subr.bf16.mxu1 %v2447_v5  ;;  %v2455_v13 = vld [vmem:[#allocation5 + $0xd8] sm:$0xff]   ;;  %v2459_v17 = vld [vmem:[#allocation5 + $0xe0] sm:$0xff]   ;;  %v2462_v20 = vld [vmem:[#allocation5 + $0x68] sm:$0xff]  }
  0x84   :  { %v2456_v14 = vld [vmem:[#allocation5 + $0x18] sm:$0xff]   ;;  %v2460_v18 = vld [vmem:[#allocation5 + $0x20] sm:$0xff]   ;;  %v2463_v21 = vld [vmem:[#allocation5 + $0xe8] sm:$0xff]  }
  0x85   :  { %2193 = vmatpush3.bf16.msra.mxu0 %v2448_v6  ;;  %v2457_v15 = vld [vmem:[#allocation5 + $0x98] sm:$0xff]   ;;  %v2461_v19 = vld [vmem:[#allocation5 + $0xa0] sm:$0xff]   ;;  %v2464_v22 = vld [vmem:[#allocation5 + $0x28] sm:$0xff]  }
  0x86   :  { %2215 = vmatpush3.bf16.msra.mxu1 %v2449_v7  ;;  %2194 = vmatprep.subr.bf16.mxu0 %v2450_v8  ;;  %v2465_v23 = vld [vmem:[#allocation5 + $0xa8] sm:$0xff]   ;;  %v2466_v24 = vld [vmem:[#allocation5 + $0x70] sm:$0xff]   ;;  %v2470_v28 = vld [vmem:[#allocation5 + $0x78] sm:$0xff]  }
  0x87   :  { %2216 = vmatprep.subr.bf16.mxu1 %v2451_v9  ;;  %v2467_v25 = vld [vmem:[#allocation5 + $0xf0] sm:$0xff]   ;;  %v2471_v29 = vld [vmem:[#allocation5 + $0xf8] sm:$0xff]   ;;  %v138_v32 = vld [vmem:[#allocation2] sm:$0xff] }
  0x88   :  { %v2468_v26 = vld [vmem:[#allocation5 + $0x30] sm:$0xff]   ;;  %v2472_v30 = vld [vmem:[#allocation5 + $0x38] sm:$0xff]   ;;  %v142_v33 = vld [vmem:[#allocation2 + $0x20] sm:$0xff] }
  0x89   :  { %2195 = vmatpush3.bf16.msra.mxu0 %v2452_v10  ;;  %v2469_v27 = vld [vmem:[#allocation5 + $0xb0] sm:$0xff]   ;;  %v2473_v31 = vld [vmem:[#allocation5 + $0xb8] sm:$0xff]   ;;  %v139_v34 = vld [vmem:[#allocation2 + $0x8] sm:$0xff]  ;;  %v2027_v35 = vcombine.low %v138_v32, %v142_v33  ;;  %v2028_v36 = vcombine.high %v138_v32, %v142_v33 }
  0x8a   :  { %2217 = vmatpush3.bf16.msra.mxu1 %v2453_v11  ;;  %2196 = vmatprep.subr.bf16.mxu0 %v2454_v12  ;;  %v143_v37 = vld [vmem:[#allocation2 + $0x28] sm:$0xff]  ;;  %v2474_v40 = vld [vmem:[#allocation5 + $0x140] sm:$0xff]   ;;  %v2482_v48 = vld [vmem:[#allocation5 + $0x150] sm:$0xff]  }
  0x8b   :  { %2218 = vmatprep.subr.bf16.mxu1 %v2455_v13  ;;  %v2029_v38 = vcombine.low %v139_v34, %v143_v37  ;;  %v2030_v39 = vcombine.high %v139_v34, %v143_v37  ;;  %737 = vmatprep.mubr.bf16.mxu0 %v2028_v36  ;;  %v2475_v41 = vld [vmem:[#allocation5 + $0x1c0] sm:$0xff]   ;;  %v2478_v44 = vld [vmem:[#allocation5 + $0x148] sm:$0xff]   ;;  %v2483_v49 = vld [vmem:[#allocation5 + $0x1d0] sm:$0xff]  }
  0x8c   :  { %v2476_v42 = vld [vmem:[#allocation5 + $0x100] sm:$0xff]   ;;  %v2479_v45 = vld [vmem:[#allocation5 + $0x1c8] sm:$0xff]   ;;  %v2484_v50 = vld [vmem:[#allocation5 + $0x110] sm:$0xff]  }
  0x8d   :  { %2197 = vmatpush3.bf16.msra.mxu0 %v2456_v14  ;;  %778 = vmatprep.mubr.bf16.mxu1 %v2030_v39  ;;  %v2477_v43 = vld [vmem:[#allocation5 + $0x180] sm:$0xff]   ;;  %v2480_v46 = vld [vmem:[#allocation5 + $0x108] sm:$0xff]   ;;  %v2485_v51 = vld [vmem:[#allocation5 + $0x190] sm:$0xff]  }
  0x8e   :  { %2219 = vmatpush3.bf16.msra.mxu1 %v2457_v15  ;;  %2198 = vmatprep.subr.bf16.mxu0 %v2458_v16  ;;  %v2481_v47 = vld [vmem:[#allocation5 + $0x188] sm:$0xff]   ;;  %v2486_v52 = vld [vmem:[#allocation5 + $0x158] sm:$0xff]   ;;  %v2490_v56 = vld [vmem:[#allocation5 + $0x160] sm:$0xff]  }
  0x8f   :  { %2220 = vmatprep.subr.bf16.mxu1 %v2459_v17  ;;  %v2487_v53 = vld [vmem:[#allocation5 + $0x1d8] sm:$0xff]   ;;  %v2491_v57 = vld [vmem:[#allocation5 + $0x1e0] sm:$0xff]   ;;  %v2494_v60 = vld [vmem:[#allocation5 + $0x168] sm:$0xff]  }
  0x90   :  { %v2488_v54 = vld [vmem:[#allocation5 + $0x118] sm:$0xff]   ;;  %v2492_v58 = vld [vmem:[#allocation5 + $0x120] sm:$0xff]   ;;  %v2495_v61 = vld [vmem:[#allocation5 + $0x1e8] sm:$0xff]  }
  0x91   :  { %2199 = vmatpush3.bf16.msra.mxu0 %v2460_v18  ;;  %v2489_v55 = vld [vmem:[#allocation5 + $0x198] sm:$0xff]   ;;  %v2493_v59 = vld [vmem:[#allocation5 + $0x1a0] sm:$0xff]   ;;  %v2496_v62 = vld [vmem:[#allocation5 + $0x128] sm:$0xff]  }
  0x92   :  { %2221 = vmatpush3.bf16.msra.mxu1 %v2461_v19  ;;  %2200 = vmatprep.subr.bf16.mxu0 %v2462_v20  ;;  %v2497_v63 = vld [vmem:[#allocation5 + $0x1a8] sm:$0xff]   ;;  %v2498_v0 = vld [vmem:[#allocation5 + $0x170] sm:$0xff]   ;;  %v2502_v4 = vld [vmem:[#allocation5 + $0x178] sm:$0xff]  }
  0x93   :  { %2222 = vmatprep.subr.bf16.mxu1 %v2463_v21  ;;  %v2499_v1 = vld [vmem:[#allocation5 + $0x1f0] sm:$0xff]   ;;  %v2503_v5 = vld [vmem:[#allocation5 + $0x1f8] sm:$0xff]   ;;  %v2508_v17 = vld [vmem:[#allocation7 + $0x4] ss:$28 sps:$4 sm:$0xff]  }
  0x94   :  { %v2500_v2 = vld [vmem:[#allocation5 + $0x130] sm:$0xff]   ;;  %v2504_v6 = vld [vmem:[#allocation5 + $0x138] sm:$0xff]   ;;  %v2509_v18 = vld [vmem:[#allocation7 + $0x8] ss:$28 sps:$4 sm:$0xff]  }
  0x95   :  { %2201 = vmatpush3.bf16.msra.mxu0 %v2464_v22  ;;  %v2501_v3 = vld [vmem:[#allocation5 + $0x1b0] sm:$0xff]   ;;  %v2505_v7 = vld [vmem:[#allocation5 + $0x1b8] sm:$0xff]   ;;  %v2511_v19 = vld [vmem:[#allocation7 + $0xc] ss:$28 sps:$4 sm:$0xff]  }
  0x96   :  { %2223 = vmatpush3.bf16.msra.mxu1 %v2465_v23  ;;  %2202 = vmatprep.subr.bf16.mxu0 %v2466_v24  ;;  %v140_v8 = vld [vmem:[#allocation2 + $0x10] sm:$0xff]  ;;  %v141_v12 = vld [vmem:[#allocation2 + $0x18] sm:$0xff]  ;;  %v2517_v21 = vld [vmem:[#allocation7 + $0x44] ss:$28 sps:$4 sm:$0xff]  }
  0x97   :  { %2224 = vmatprep.subr.bf16.mxu1 %v2467_v25  ;;  %v144_v9 = vld [vmem:[#allocation2 + $0x30] sm:$0xff]  ;;  %v145_v13 = vld [vmem:[#allocation2 + $0x38] sm:$0xff]  ;;  %v2532_v32 = vld [vmem:[#allocation7 + $0xe4] ss:$28 sps:$4 sm:$0xff]  }
  0x98   :  { %v2031_v10 = vcombine.low %v140_v8, %v144_v9  ;;  %v2032_v11 = vcombine.high %v140_v8, %v144_v9  ;;  %v2033_v14 = vcombine.low %v141_v12, %v145_v13  ;;  %v2034_v15 = vcombine.high %v141_v12, %v145_v13  ;;  %v2506_v16 = vld [vmem:[#allocation7] ss:$28 sps:$4 sm:$0xff]   ;;  %v2512_v22 = vld [vmem:[#allocation7 + $0x38] ss:$28 sps:$4 sm:$0xff]   ;;  %v2535_v33 = vld [vmem:[#allocation7 + $0xec] ss:$28 sps:$4 sm:$0xff]  }
  0x99   :  { %2203 = vmatpush3.bf16.msra.mxu0 %v2468_v26  ;;  %v2514_v20 = vld [vmem:[#allocation7 + $0x3c] ss:$28 sps:$4 sm:$0xff]   ;;  %v2520_v24 = vld [vmem:[#allocation7 + $0x74] ss:$28 sps:$4 sm:$0xff]   ;;  %v2541_v37 = vld [vmem:[#allocation7 + $0x124] ss:$28 sps:$4 sm:$0xff]  }
  0x9a   :  { %2225 = vmatpush3.bf16.msra.mxu1 %v2469_v27  ;;  %2204 = vmatprep.subr.bf16.mxu0 %v2470_v28  ;;  %v2515_v23 = vld [vmem:[#allocation7 + $0x40] ss:$28 sps:$4 sm:$0xff]   ;;  %v2518_v26 = vld [vmem:[#allocation7 + $0x70] ss:$28 sps:$4 sm:$0xff]   ;;  %v2521_v27 = vld [vmem:[#allocation7 + $0x78] ss:$28 sps:$4 sm:$0xff]  }
  0x9b   :  { %2226 = vmatprep.subr.bf16.mxu1 %v2471_v29  ;;  %v2523_v25 = vld [vmem:[#allocation7 + $0x7c] ss:$28 sps:$4 sm:$0xff]   ;;  %v2526_v28 = vld [vmem:[#allocation7 + $0xac] ss:$28 sps:$4 sm:$0xff]   ;;  %v2529_v29 = vld [vmem:[#allocation7 + $0xb4] ss:$28 sps:$4 sm:$0xff]  }
  0x9c   :  { %v2530_v34 = vld [vmem:[#allocation7 + $0xe0] ss:$28 sps:$4 sm:$0xff]  }
  0x9d   :  { %2205 = vmatpush3.bf16.msra.mxu0 %v2472_v30  ;;  %v2524_v30 = vld [vmem:[#allocation7 + $0xa8] ss:$28 sps:$4 sm:$0xff]   ;;  %v2538_v36 = vld [vmem:[#allocation7 + $0x11c] ss:$28 sps:$4 sm:$0xff]  }
  0x9e   :  { %2227 = vmatpush3.bf16.msra.mxu1 %v2473_v31  ;;  %2234 = vmatprep.subr.bf16.mxu0 %v2474_v40  ;;  %v2527_v31 = vld [vmem:[#allocation7 + $0xb0] ss:$28 sps:$4 sm:$0xff]   ;;  %v2539_v39 = vld [vmem:[#allocation7 + $0x120] ss:$28 sps:$4 sm:$0xff]  }
  0x9f   :  { %2256 = vmatprep.subr.bf16.mxu1 %v2475_v41  ;;  %v2544_v40 = vld [vmem:[#allocation7 + $0x154] ss:$28 sps:$4 sm:$0xff]   ;;  %v2547_v41 = vld [vmem:[#allocation7 + $0x15c] ss:$28 sps:$4 sm:$0xff]  }
  0xa0   :  { %738 = vmatmul.mubr.bf16.vlgmr.msra.gmra.mrb[0].mxu0 %v2027_v35  ;;  %v2533_v35 = vld [vmem:[#allocation7 + $0xe8] ss:$28 sps:$4 sm:$0xff]  }
  0xa1   :  { %779 = vmatmul.mubr.bf16.vlgmr.msra.gmra.mrb[0].mxu1 %v2029_v38  ;;  %2235 = vmatpush3.bf16.msra.mxu0 %v2476_v42  ;;  %v2536_v38 = vld [vmem:[#allocation7 + $0x118] ss:$28 sps:$4 sm:$0xff]   ;;  %v2542_v42 = vld [vmem:[#allocation7 + $0x150] ss:$28 sps:$4 sm:$0xff]  }
  0xa2   :  { %2257 = vmatpush3.bf16.msra.mxu1 %v2477_v43  ;;  %2236 = vmatprep.subr.bf16.mxu0 %v2478_v44  ;;  %v2545_v43 = vld [vmem:[#allocation7 + $0x158] ss:$28 sps:$4 sm:$0xff]   ;;  %v2550_v44 = vld [vmem:[#allocation7 + $0x18c] ss:$28 sps:$4 sm:$0xff]  }
  0xa3   :  { %2258 = vmatprep.subr.bf16.mxu1 %v2479_v45  ;;  %819 = vmatprep.mubr.bf16.mxu0 %v2032_v11  ;;  %v2553_v45 = vld [vmem:[#allocation7 + $0x194] ss:$28 sps:$4 sm:$0xff]  }
  0xa4   :  { %860 = vmatprep.mubr.bf16.mxu1 %v2034_v15 }
  0xa5   :  { %2237 = vmatpush3.bf16.msra.mxu0 %v2480_v46  ;;  %v2548_v46 = vld [vmem:[#allocation7 + $0x188] ss:$28 sps:$4 sm:$0xff]  }
  0xa6   :  { %2259 = vmatpush3.bf16.msra.mxu1 %v2481_v47  ;;  %2238 = vmatprep.subr.bf16.mxu0 %v2482_v48  ;;  %v2551_v47 = vld [vmem:[#allocation7 + $0x190] ss:$28 sps:$4 sm:$0xff]  }
  0xa7   :  { %2260 = vmatprep.subr.bf16.mxu1 %v2483_v49  ;;  %v2556_v48 = vld [vmem:[#allocation7 + $0x14] ss:$28 sps:$4 sm:$0xff]   ;;  %v2865_v49 = vmov 0  }
  0xa9   :  { %2239 = vmatpush3.bf16.msra.mxu0 %v2484_v50  ;;  %v2866_v50 = vmov 0.0  }
  0xaa   :  { %2261 = vmatpush3.bf16.msra.mxu1 %v2485_v51  ;;  %2240 = vmatprep.subr.bf16.mxu0 %v2486_v52 }
  0xab   :  { %2262 = vmatprep.subr.bf16.mxu1 %v2487_v53  ;;  %v2026_v53 = vld [vmem:[%s3202_s2] ss:$0 sm:$0xff] }
  0xad   :  { %2241 = vmatpush3.bf16.msra.mxu0 %v2488_v54 }
  0xae   :  { %2263 = vmatpush3.bf16.msra.mxu1 %v2489_v55  ;;  %2242 = vmatprep.subr.bf16.mxu0 %v2490_v56 }
  0xaf   :  { %2264 = vmatprep.subr.bf16.mxu1 %v2491_v57 }
  0xb1   :  { %2243 = vmatpush3.bf16.msra.mxu0 %v2492_v58 }
  0xb2   :  { %2265 = vmatpush3.bf16.msra.mxu1 %v2493_v59  ;;  %2244 = vmatprep.subr.bf16.mxu0 %v2494_v60 }
  0xb3   :  { %2266 = vmatprep.subr.bf16.mxu1 %v2495_v61 }
  0xb5   :  { %2245 = vmatpush3.bf16.msra.mxu0 %v2496_v62 }
  0xb6   :  { %2267 = vmatpush3.bf16.msra.mxu1 %v2497_v63  ;;  %2246 = vmatprep.subr.bf16.mxu0 %v2498_v0 }
  0xb7   :  { %2268 = vmatprep.subr.bf16.mxu1 %v2499_v1 }
  0xb9   :  { %2247 = vmatpush3.bf16.msra.mxu0 %v2500_v2 }
  0xba   :  { %2269 = vmatpush3.bf16.msra.mxu1 %v2501_v3  ;;  %2248 = vmatprep.subr.bf16.mxu0 %v2502_v4 }
  0xbb   :  { %2270 = vmatprep.subr.bf16.mxu1 %v2503_v5 }
  0xbd   :  { %2249 = vmatpush3.bf16.msra.mxu0 %v2504_v6 }
  0xbe   :  { %2271 = vmatpush3.bf16.msra.mxu1 %v2505_v7  ;;  %1261 = vmatprep.subr.bf16.mxu0 %v2508_v17 }
  0xbf   :  { %1304 = vmatprep.subr.bf16.mxu1 %v2511_v19 }
  0xc0   :  { %820 = vmatmul.mubr.bf16.vlgmr.msra.gmra.mrb[4].mxu0 %v2031_v10 }
  0xc1   :  { %861 = vmatmul.mubr.bf16.vlgmr.msra.gmra.mrb[4].mxu1 %v2033_v14  ;;  %1262 = vmatpush1.bf16.msra.mxu0 %v2506_v16 }
  0xc2   :  { %1305 = vmatpush1.bf16.msra.mxu1 %v2509_v18  ;;  %1263 = vmatprep.subr.bf16.mxu0 %v2514_v20 }
  0xc3   :  { %1306 = vmatprep.subr.bf16.mxu1 %v2517_v21  ;;  %1293 = vmatprep.mubr.bf16.mxu0 %v2865_v49 }
  0xc4   :  { %1336 = vmatprep.mubr.bf16.mxu1 %v2865_v49 }
  0xc5   :  { %1264 = vmatpush1.bf16.msra.mxu0 %v2512_v22  ;;  %v2554_v22 = vld [vmem:[#allocation7 + $0x10] ss:$28 sps:$4 sm:$0xff]  }
  0xc6   :  { %1307 = vmatpush1.bf16.msra.mxu1 %v2515_v23  ;;  %1265 = vmatprep.subr.bf16.mxu0 %v2520_v24  ;;  %v2557_v23 = vld [vmem:[#allocation7 + $0x18] ss:$28 sps:$4 sm:$0xff]  }
  0xc7   :  { %1308 = vmatprep.subr.bf16.mxu1 %v2523_v25  ;;  %v2560_v25 = vld [vmem:[#allocation7 + $0x4c] ss:$28 sps:$4 sm:$0xff]  }
  0xc9   :  { %1266 = vmatpush1.bf16.msra.mxu0 %v2518_v26  ;;  %v2558_v26 = vld [vmem:[#allocation7 + $0x48] ss:$28 sps:$4 sm:$0xff]  }
  0xca   :  { %1309 = vmatpush1.bf16.msra.mxu1 %v2521_v27  ;;  %1267 = vmatprep.subr.bf16.mxu0 %v2526_v28  ;;  %v2561_v27 = vld [vmem:[#allocation7 + $0x50] ss:$28 sps:$4 sm:$0xff]   ;;  %v2564_v28 = vld [vmem:[#allocation7 + $0x84] ss:$28 sps:$4 sm:$0xff]  }
  0xcb   :  { %1310 = vmatprep.subr.bf16.mxu1 %v2529_v29  ;;  %v2562_v29 = vld [vmem:[#allocation7 + $0x80] ss:$28 sps:$4 sm:$0xff]  }
  0xcd   :  { %1268 = vmatpush1.bf16.msra.mxu0 %v2524_v30  ;;  %v2565_v30 = vld [vmem:[#allocation7 + $0x88] ss:$28 sps:$4 sm:$0xff]  }
  0xce   :  { %1311 = vmatpush1.bf16.msra.mxu1 %v2527_v31  ;;  %1269 = vmatprep.subr.bf16.mxu0 %v2532_v32  ;;  %v2568_v31 = vld [vmem:[#allocation7 + $0xbc] ss:$28 sps:$4 sm:$0xff]  }
  0xcf   :  { %1312 = vmatprep.subr.bf16.mxu1 %v2535_v33  ;;  %v2566_v32 = vld [vmem:[#allocation7 + $0xb8] ss:$28 sps:$4 sm:$0xff]   ;;  %v2569_v33 = vld [vmem:[#allocation7 + $0xc0] ss:$28 sps:$4 sm:$0xff]  }
  0xd1   :  { %1270 = vmatpush1.bf16.msra.mxu0 %v2530_v34  ;;  %v2572_v34 = vld [vmem:[#allocation7 + $0xf4] ss:$28 sps:$4 sm:$0xff]  }
  0xd2   :  { %1313 = vmatpush1.bf16.msra.mxu1 %v2533_v35  ;;  %1271 = vmatprep.subr.bf16.mxu0 %v2538_v36  ;;  %v2570_v35 = vld [vmem:[#allocation7 + $0xf0] ss:$28 sps:$4 sm:$0xff]   ;;  %v2573_v36 = vld [vmem:[#allocation7 + $0xf8] ss:$28 sps:$4 sm:$0xff]  }
  0xd3   :  { %1314 = vmatprep.subr.bf16.mxu1 %v2541_v37  ;;  %v2576_v37 = vld [vmem:[#allocation7 + $0x12c] ss:$28 sps:$4 sm:$0xff]  }
  0xd5   :  { %1272 = vmatpush1.bf16.msra.mxu0 %v2536_v38  ;;  %v2574_v38 = vld [vmem:[#allocation7 + $0x128] ss:$28 sps:$4 sm:$0xff]  }
  0xd6   :  { %1315 = vmatpush1.bf16.msra.mxu1 %v2539_v39  ;;  %1273 = vmatprep.subr.bf16.mxu0 %v2544_v40  ;;  %v2577_v39 = vld [vmem:[#allocation7 + $0x130] ss:$28 sps:$4 sm:$0xff]   ;;  %v2580_v40 = vld [vmem:[#allocation7 + $0x164] ss:$28 sps:$4 sm:$0xff]  }
  0xd7   :  { %1316 = vmatprep.subr.bf16.mxu1 %v2547_v41  ;;  %v2578_v41 = vld [vmem:[#allocation7 + $0x160] ss:$28 sps:$4 sm:$0xff]  }
  0xd9   :  { %1274 = vmatpush1.bf16.msra.mxu0 %v2542_v42  ;;  %v2581_v42 = vld [vmem:[#allocation7 + $0x168] ss:$28 sps:$4 sm:$0xff]  }
  0xda   :  { %1317 = vmatpush1.bf16.msra.mxu1 %v2545_v43  ;;  %1275 = vmatprep.subr.bf16.mxu0 %v2550_v44  ;;  %v2584_v43 = vld [vmem:[#allocation7 + $0x19c] ss:$28 sps:$4 sm:$0xff]  }
  0xdb   :  { %1318 = vmatprep.subr.bf16.mxu1 %v2553_v45  ;;  %v2582_v44 = vld [vmem:[#allocation7 + $0x198] ss:$28 sps:$4 sm:$0xff]   ;;  %v2585_v45 = vld [vmem:[#allocation7 + $0x1a0] ss:$28 sps:$4 sm:$0xff]  }
  0xdd   :  { %1276 = vmatpush1.bf16.msra.mxu0 %v2548_v46  ;;  %v2586_v46 = vld [vmem:[#allocation8] sm:$0xff]  }
  0xde   :  { %1319 = vmatpush1.bf16.msra.mxu1 %v2551_v47  ;;  %1347 = vmatprep.subr.bf16.mxu0 %v2556_v48  ;;  %v2587_v47 = vld [vmem:[#allocation8 + $0x8] sm:$0xff]   ;;  %v2588_v48 = vld [vmem:[#allocation8 + $0x10] sm:$0xff]  }
  0xdf   :  { %2323 = vmatprep.subr.bf16.mxu1 %v2866_v50 }
 0x173   :  { %v2206_v51 = vpop.f32.mrb[0].mxu0 }
 0x174   :  { %v2228_v52 = vpop.f32.mrb[0].mxu1  ;;  %v2207_v54 = vpop.f32.mrb[1].mxu0 }
 0x175   :  { %v2208_v55 = vadd.f32 %v2207_v54, %v2206_v51  ;;  %v2229_v56 = vpop.f32.mrb[1].mxu1  ;;  %v2209_v57 = vpop.f32.mrb[2].mxu0  ;;  %v2590_v51 = vld [vmem:[#allocation8 + $0x20] sm:$0xff]   ;;  %v2593_v54 = vld [vmem:[#allocation8 + $0x38] sm:$0xff]  }
 0x176   :  { %v2230_v58 = vadd.f32 %v2229_v56, %v2228_v52  ;;  %v2231_v59 = vpop.f32.mrb[2].mxu1  ;;  %v2210_v60 = vpop.f32.mrb[3].mxu0  ;;  %v2591_v52 = vld [vmem:[#allocation8 + $0x28] sm:$0xff]  }
 0x177   :  { %v740_v61 = vadd.f32 %v2208_v55, %v2026_v53  ;;  %v2211_v62 = vadd.f32 %v2210_v60, %v2209_v57  ;;  %v2232_v63 = vpop.f32.mrb[3].mxu1  ;;  %v938_v55 = vlaneseq }
 0x178   :  { %v2233_v0 = vadd.f32 %v2232_v63, %v2231_v59 }
 0x179   :  { %v781_v1 = vadd.f32 %v2230_v58, %v740_v61  ;;  %v743_v2 = vadd.f32 %v2211_v62, %v2026_v53  ;;  %v2592_v53 = vld [vmem:[#allocation8 + $0x30] sm:$0xff]   ;;  %v3062_v56 = vshrl.u32 %v938_v55, 7  ;;  %v3068_v58 = vld [vmem:[%s3204_s4] sm:$0xff] }
 0x17b   :  { %v784_v3 = vadd.f32 %v2233_v0, %v743_v2  ;;  %v940_v57 = vsub.s32 0, %v3062_v56  ;;  %v948_v60 = vsub.s32 2, %v3062_v56  ;;  %v952_v61 = vsub.s32 3, %v3062_v56 }
 0x17d   :  { %v941_v59 = vrot.slane %v3068_v58, %v940_v57 }
 0x193   :  { %v2250_v4 = vpop.f32.mrb[4].mxu0 }
 0x194   :  { %v2272_v5 = vpop.f32.mrb[4].mxu1  ;;  %v2251_v6 = vpop.f32.mrb[5].mxu0 }
 0x195   :  { %v2252_v7 = vadd.f32 %v2251_v6, %v2250_v4  ;;  %v2273_v8 = vpop.f32.mrb[5].mxu1  ;;  %v2253_v9 = vpop.f32.mrb[6].mxu0  ;;  %v953_v4 = vrot.slane %v3068_v58, %v952_v61 }
 0x196   :  { %v2274_v10 = vadd.f32 %v2273_v8, %v2272_v5  ;;  %v2275_v11 = vpop.f32.mrb[6].mxu1  ;;  %v2254_v12 = vpop.f32.mrb[7].mxu0 }
 0x197   :  { %v822_v13 = vadd.f32 %v2252_v7, %v781_v1  ;;  %v2255_v14 = vadd.f32 %v2254_v12, %v2253_v9  ;;  %v2276_v15 = vpop.f32.mrb[7].mxu1  ;;  %v949_v1 = vrot.slane %v3068_v58, %v948_v60 }
 0x198   :  { %v2277_v16 = vadd.f32 %v2276_v15, %v2275_v11  ;;  %v956_v15 = vsub.s32 4, %v3062_v56 }
 0x199   :  { %v863_v17 = vadd.f32 %v2274_v10, %v822_v13  ;;  %v825_v18 = vadd.f32 %v2255_v14, %v784_v3 }
 0x19b   :  { %v866_v19 = vadd.f32 %v2277_v16, %v825_v18  ;;  %v869_v20 = vmax.f32 %v863_v17, 0.0  ;;  %v964_v16 = vsub.s32 6, %v3062_v56  ;;  %v960_v17 = vsub.s32 5, %v3062_v56 }
 0x19d   :  { %v870_v21 = vmax.f32 %v866_v19, 0.0 }
 0x19f   :  { %v871_v24 = vpack.c.bf16 %v870_v21, %v869_v20  ;;  %v957_v20 = vrot.slane %v3068_v58, %v956_v15  ;;  %v965_v21 = vrot.slane %v3068_v58, %v964_v16  ;;  %v2597_v15 = vld [vmem:[#allocation10 + $0x18] sm:$0xff]  }
 0x1a1   :  { %1294 = vmatmul.mubr.bf16.vlgmr.msra.gmra.mrb[8].mxu0 %v871_v24  ;;  %1337 = vmatmul.mubr.bf16.vlgmr.msra.gmra.mrb[8].mxu1 %v871_v24 }
 0x1a2   :  { %1348 = vmatpush1.bf16.msra.mxu0 %v2554_v22  ;;  %2324 = vmatpush3.bf16.msra.mxu1 %v2557_v23 }
 0x1a3   :  { %1349 = vmatprep.subr.bf16.mxu0 %v2560_v25  ;;  %2325 = vmatprep.subr.bf16.mxu1 %v2866_v50 }
 0x1a4   :  { %1379 = vmatprep.mubr.bf16.mxu0 %v2865_v49  ;;  %2339 = vmatprep.mubr.msk.bf16.mxu1 %vm2867_vm0, %v2866_v50  ;;  %v2589_v49 = vld [vmem:[#allocation8 + $0x18] sm:$0xff]  }
 0x1a6   :  { %1350 = vmatpush1.bf16.msra.mxu0 %v2558_v26  ;;  %2326 = vmatpush3.bf16.msra.mxu1 %v2561_v27 }
 0x1a7   :  { %1351 = vmatprep.subr.bf16.mxu0 %v2564_v28  ;;  %2327 = vmatprep.subr.bf16.mxu1 %v2866_v50 }
 0x1aa   :  { %1352 = vmatpush1.bf16.msra.mxu0 %v2562_v29  ;;  %2328 = vmatpush3.bf16.msra.mxu1 %v2565_v30 }
 0x1ab   :  { %1353 = vmatprep.subr.bf16.mxu0 %v2568_v31  ;;  %2329 = vmatprep.subr.bf16.mxu1 %v2866_v50 }
 0x1ae   :  { %1354 = vmatpush1.bf16.msra.mxu0 %v2566_v32  ;;  %2330 = vmatpush3.bf16.msra.mxu1 %v2569_v33  ;;  %v2155_v32 = vld [vmem:[%s3206_s6] ss:$0 sm:$0xff] }
 0x1af   :  { %1355 = vmatprep.subr.bf16.mxu0 %v2572_v34  ;;  %2331 = vmatprep.subr.bf16.mxu1 %v2866_v50 }
 0x1b2   :  { %1356 = vmatpush1.bf16.msra.mxu0 %v2570_v35  ;;  %2332 = vmatpush3.bf16.msra.mxu1 %v2573_v36 }
 0x1b3   :  { %1357 = vmatprep.subr.bf16.mxu0 %v2576_v37  ;;  %2333 = vmatprep.subr.bf16.mxu1 %v2866_v50 }
 0x1b6   :  { %1358 = vmatpush1.bf16.msra.mxu0 %v2574_v38  ;;  %2334 = vmatpush3.bf16.msra.mxu1 %v2577_v39 }
 0x1b7   :  { %1359 = vmatprep.subr.bf16.mxu0 %v2580_v40  ;;  %2335 = vmatprep.subr.bf16.mxu1 %v2866_v50 }
 0x1ba   :  { %1360 = vmatpush1.bf16.msra.mxu0 %v2578_v41  ;;  %2336 = vmatpush3.bf16.msra.mxu1 %v2581_v42 }
 0x1bb   :  { %1361 = vmatprep.subr.bf16.mxu0 %v2584_v43  ;;  %2337 = vmatprep.subr.bf16.mxu1 %v2866_v50 }
 0x1be   :  { %1362 = vmatpush1.bf16.msra.mxu0 %v2582_v44  ;;  %2338 = vmatpush3.bf16.msra.mxu1 %v2585_v45  ;;  %v2594_v44 = vld [vmem:[#allocation10] sm:$0xff]   ;;  %v2595_v45 = vld [vmem:[#allocation10 + $0x8] sm:$0xff]  }
 0x1bf   :  { %2343 = vmatprep.subr.bf16.mxu0 %v2866_v50  ;;  %2363 = vmatprep.subr.bf16.mxu1 %v2866_v50 }
 0x1c1   :  { %1380 = vmatmul.mubr.bf16.vlgmr.msra.gmra.mrb[12].mxu0 %v871_v24  ;;  %2340 = vmatmul.mubr.bf16.vlgmr.msra.gmra.mrb[12].mxu1 %v871_v24  ;;  %v961_v24 = vrot.slane %v3068_v58, %v960_v17  ;;  %v2598_v17 = vld [vmem:[#allocation10 + $0x20] sm:$0xff]  }
 0x1c2   :  { %2344 = vmatpush3.bf16.msra.mxu0 %v2586_v46  ;;  %2359 = vmatprep.mubr.msk.bf16.mxu0 %vm2867_vm0, %v2866_v50  ;;  %v2596_v46 = vld [vmem:[#allocation10 + $0x10] sm:$0xff]  }
 0x1c3   :  { %2345 = vmatprep.subr.bf16.mxu0 %v2866_v50  ;;  %2379 = vmatprep.mubr.msk.bf16.mxu1 %vm2867_vm0, %v2866_v50 }
 0x1c4   :  { %2364 = vmatpush3.bf16.msra.mxu1 %v2594_v44 }
 0x1c5   :  { %2365 = vmatprep.subr.bf16.mxu1 %v2866_v50 }
 0x1c6   :  { %2346 = vmatpush3.bf16.msra.mxu0 %v2587_v47 }
 0x1c7   :  { %2347 = vmatprep.subr.bf16.mxu0 %v2866_v50 }
 0x1c8   :  { %2366 = vmatpush3.bf16.msra.mxu1 %v2595_v45 }
 0x1c9   :  { %2367 = vmatprep.subr.bf16.mxu1 %v2866_v50 }
 0x1ca   :  { %2348 = vmatpush3.bf16.msra.mxu0 %v2588_v48 }
 0x1cb   :  { %2349 = vmatprep.subr.bf16.mxu0 %v2866_v50 }
 0x1cc   :  { %2368 = vmatpush3.bf16.msra.mxu1 %v2596_v46 }
 0x1cd   :  { %2369 = vmatprep.subr.bf16.mxu1 %v2866_v50 }
 0x1ce   :  { %2350 = vmatpush3.bf16.msra.mxu0 %v2589_v49 }
 0x1cf   :  { %2351 = vmatprep.subr.bf16.mxu0 %v2866_v50 }
 0x1d0   :  { %2370 = vmatpush3.bf16.msra.mxu1 %v2597_v15  ;;  %v2611_v15 = vld [vmem:[#allocation13 + $0x8] sm:$0xff]  }
 0x1d1   :  { %2371 = vmatprep.subr.bf16.mxu1 %v2866_v50 }
 0x1d2   :  { %2352 = vmatpush3.bf16.msra.mxu0 %v2590_v51 }
 0x1d3   :  { %2353 = vmatprep.subr.bf16.mxu0 %v2866_v50 }
 0x1d4   :  { %2372 = vmatpush3.bf16.msra.mxu1 %v2598_v17  ;;  %v2613_v17 = vld [vmem:[#allocation13 + $0x18] sm:$0xff]  }
 0x1d5   :  { %2373 = vmatprep.subr.bf16.mxu1 %v2866_v50 }
 0x1d6   :  { %2354 = vmatpush3.bf16.msra.mxu0 %v2591_v52 }
 0x1d7   :  { %2355 = vmatprep.subr.bf16.mxu0 %v2866_v50 }
 0x1da   :  { %2356 = vmatpush3.bf16.msra.mxu0 %v2592_v53 }
 0x1db   :  { %2357 = vmatprep.subr.bf16.mxu0 %v2866_v50 }
 0x1de   :  { %2358 = vmatpush3.bf16.msra.mxu0 %v2593_v54 }
 0x1df   :  { %2383 = vmatprep.subr.bf16.mxu0 %v2866_v50 }
 0x274   :  { %v1295_v62 = vpop.f32.mrb[8].mxu0  ;;  %v1338_v63 = vpop.f32.mrb[8].mxu1 }
 0x275   :  { %v1296_v0 = vadd.f32 %v1295_v62, %v941_v59  ;;  %v3074_v2 = vpop.f32.mrb[9].mxu0  ;;  %v1340_v3 = vpop.f32.mrb[9].mxu1  ;;  %v1339_v43 = vadd.f32 %v1338_v63, %v949_v1 }
 0x276   :  { %v1299_v5 = vpop.f32.mrb[10].mxu0  ;;  %v1342_v6 = vpop.f32.mrb[10].mxu1  ;;  %v1341_v39 = vadd.f32 %v1340_v3, %v953_v4 }
 0x277   :  { %v1300_v7 = vadd.f32 %v1299_v5, %v941_v59  ;;  %v3077_v8 = vadd.f32 %v1342_v6, %v949_v1  ;;  %v3079_v9 = vpop.f32.mrb[11].mxu0  ;;  %v1344_v10 = vpop.f32.mrb[11].mxu1  ;;  %v1431_v12 = vmax.f32 %v1296_v0, 0.0 }
 0x278   :  { %v3081_v11 = vadd.f32 %v1344_v10, %v953_v4 }
 0x279   :  { %v1432_v13 = vmax.f32 %v1300_v7, 0.0 }
 0x27b   :  { %v1435_v14 = vpack.c.bf16 %v1432_v13, %v1431_v12 }
 0x27d   :  { %2360 = vmatmul.mubr.bf16.vlgmr.msra.gmra.mrb[16].mxu0 %v1435_v14 }
 0x27e   :  { %2399 = vmatprep.mubr.msk.bf16.mxu0 %vm2867_vm0, %v2866_v50 }
 0x294   :  { %v1381_v18 = vpop.f32.mrb[12].mxu0  ;;  %v1424_v19 = vpop.f32.mrb[12].mxu1 }
 0x295   :  { %v1383_v22 = vpop.f32.mrb[13].mxu0  ;;  %v2341_v23 = vpop.f32.mrb[13].mxu1  ;;  %v1382_v40 = vadd.f32 %v1381_v18, %v957_v20  ;;  %v1425_v42 = vadd.f32 %v1424_v19, %v965_v21  ;;  %v2599_v19 = vld [vmem:[#allocation10 + $0x28] sm:$0xff]  }
 0x296   :  { %v1385_v25 = vpop.f32.mrb[14].mxu0  ;;  %v1427_v26 = vpop.f32.mrb[14].mxu1  ;;  %v1384_v41 = vadd.f32 %v1383_v22, %v961_v24  ;;  %2374 = vmatpush3.bf16.msra.mxu1 %v2599_v19  ;;  %v2601_v22 = vld [vmem:[#allocation10 + $0x38] sm:$0xff]   ;;  %v2615_v19 = vld [vmem:[#allocation13 + $0x28] sm:$0xff]  }
 0x297   :  { %v3091_v27 = vadd.f32 %v1385_v25, %v957_v20  ;;  %v3093_v28 = vadd.f32 %v1427_v26, %v965_v21  ;;  %v1387_v29 = vpop.f32.mrb[15].mxu0  ;;  %v2342_v30 = vpop.f32.mrb[15].mxu1  ;;  %2375 = vmatprep.subr.bf16.mxu1 %v2866_v50  ;;  %v2600_v21 = vld [vmem:[#allocation10 + $0x30] sm:$0xff]  }
 0x298   :  { %v3095_v31 = vadd.f32 %v1387_v29, %v961_v24 }
 0x29a   :  { %2376 = vmatpush3.bf16.msra.mxu1 %v2600_v21 }
 0x29b   :  { %2377 = vmatprep.subr.bf16.mxu1 %v2866_v50 }
 0x29e   :  { %2378 = vmatpush3.bf16.msra.mxu1 %v2601_v22 }
 0x29f   :  { %2403 = vmatprep.subr.bf16.mxu1 %v2866_v50 }
 0x350   :  { %v1541_v33 = vpop.f32.mrb[16].mxu0 }
 0x351   :  { %v1542_v34 = vadd.f32 %v2155_v32, %v1541_v33  ;;  %v2361_v35 = vpop.f32.mrb[17].mxu0 }
 0x352   :  { %v1544_v36 = vpop.f32.mrb[18].mxu0 }
 0x353   :  { %1548 = vmax.xlane.f32.xlu0 %v1542_v34  ;;  %v2362_v37 = vpop.f32.mrb[19].mxu0  ;;  %v1545_v38 = vadd.f32 %v2155_v32, %v1544_v36 }
 0x357   :  { %1550 = vmax.xlane.f32.xlu0 %v1545_v38 }
 0x35b   :  { %1902 = vmax.xlane.f32.xlu0 %v1341_v39 }
 0x35f   :  { %1922 = vmax.xlane.f32.xlu0 %v1382_v40 }
 0x363   :  { %1942 = vmax.xlane.f32.xlu0 %v1384_v41 }
 0x367   :  { %1962 = vmax.xlane.f32.xlu0 %v1425_v42 }
 0x36b   :  { %1982 = vmax.xlane.f32.xlu0 %v1339_v43 }
 0x3e0   :  { %v1549_v47 = vpop.xlane.xlu0 %1548 }
 0x3e1   :  { %v1552_v48 = vsub.f32 %v1542_v34, %v1549_v47 }
 0x3e3   :  { %v1554_v49 = vmul.f32 1.442695, %v1552_v48 }
 0x3e4   :  { %v1551_v51 = vpop.xlane.xlu0 %1550 }
 0x3e5   :  { %2618 = vpow2.f32 %v1554_v49  ;;  %v1553_v52 = vsub.f32 %v1545_v38, %v1551_v51 }
 0x3e7   :  { %v1556_v53 = vmul.f32 1.442695, %v1553_v52 }
 0x3e8   :  { %v1903_v54 = vpop.xlane.xlu0 %1902 }
 0x3e9   :  { %2620 = vpow2.f32 %v1556_v53  ;;  %v1906_v55 = vsub.f32 %v1341_v39, %v1903_v54 }
 0x3eb   :  { %v1908_v57 = vmul.f32 1.442695, %v1906_v55 }
 0x3ec   :  { %v1923_v59 = vpop.xlane.xlu0 %1922 }
 0x3ed   :  { %2622 = vpow2.f32 %v1908_v57  ;;  %v1926_v60 = vsub.f32 %v1382_v40, %v1923_v59 }
 0x3ef   :  { %v2619_v61 = vpop.eup %2618  ;;  %v1928_v62 = vmul.f32 1.442695, %v1926_v60 }
 0x3f0   :  { %1558 = vadd.xlane.f32.xlu1 %v2619_v61  ;;  %v1943_v63 = vpop.xlane.xlu0 %1942 }
 0x3f1   :  { %2624 = vpow2.f32 %v1928_v62  ;;  %v1946_v0 = vsub.f32 %v1384_v41, %v1943_v63 }
 0x3f3   :  { %v3103_v1 = vpop.eup %2620  ;;  %v1948_v3 = vmul.f32 1.442695, %v1946_v0 }
 0x3f4   :  { %1560 = vadd.xlane.f32.xlu1 %v3103_v1  ;;  %v1963_v4 = vpop.xlane.xlu0 %1962 }
 0x3f5   :  { %2626 = vpow2.f32 %v1948_v3  ;;  %v1966_v5 = vsub.f32 %v1425_v42, %v1963_v4  ;;  %v2602_v3 = vld [vmem:[#allocation11] sm:$0xff]   ;;  %v2603_v4 = vld [vmem:[#allocation11 + $0x8] sm:$0xff]  }
 0x3f6   :  { %2384 = vmatpush3.bf16.msra.mxu0 %v2602_v3 }
 0x3f7   :  { %v3106_v6 = vpop.eup %2622  ;;  %v1968_v7 = vmul.f32 1.442695, %v1966_v5  ;;  %2385 = vmatprep.subr.bf16.mxu0 %v2866_v50  ;;  %v2604_v5 = vld [vmem:[#allocation11 + $0x10] sm:$0xff]  }
 0x3f8   :  { %1904 = vmax.xlane.f32.xlu1 %v3081_v11  ;;  %1912 = vadd.xlane.f32.xlu0 %v3106_v6  ;;  %v1983_v10 = vpop.xlane.xlu0 %1982 }
 0x3f9   :  { %2628 = vpow2.f32 %v1968_v7  ;;  %v1986_v12 = vsub.f32 %v1339_v43, %v1983_v10  ;;  %v2606_v7 = vld [vmem:[#allocation11 + $0x20] sm:$0xff]   ;;  %v2607_v10 = vld [vmem:[#allocation11 + $0x28] sm:$0xff]  }
 0x3fa   :  { %2386 = vmatpush3.bf16.msra.mxu0 %v2603_v4 }
 0x3fb   :  { %v3110_v13 = vpop.eup %2624  ;;  %v1988_v14 = vmul.f32 1.442695, %v1986_v12  ;;  %2387 = vmatprep.subr.bf16.mxu0 %v2866_v50  ;;  %v2608_v12 = vld [vmem:[#allocation11 + $0x30] sm:$0xff]  }
 0x3fc   :  { %1924 = vmax.xlane.f32.xlu1 %v3091_v27  ;;  %1932 = vadd.xlane.f32.xlu0 %v3110_v13 }
 0x3fd   :  { %2630 = vpow2.f32 %v1988_v14  ;;  %v2610_v14 = vld [vmem:[#allocation13] sm:$0xff]  }
 0x3fe   :  { %2388 = vmatpush3.bf16.msra.mxu0 %v2604_v5 }
 0x3ff   :  { %v3114_v16 = vpop.eup %2626  ;;  %2389 = vmatprep.subr.bf16.mxu0 %v2866_v50 }
 0x400   :  { %1944 = vmax.xlane.f32.xlu1 %v3095_v31  ;;  %1952 = vadd.xlane.f32.xlu0 %v3114_v16 }
 0x403   :  { %v3119_v18 = vpop.eup %2628 }
 0x404   :  { %1964 = vmax.xlane.f32.xlu1 %v3093_v28  ;;  %1972 = vadd.xlane.f32.xlu0 %v3119_v18 }
 0x407   :  { %v3124_v20 = vpop.eup %2630 }
 0x408   :  { %1984 = vmax.xlane.f32.xlu1 %v3077_v8  ;;  %1992 = vadd.xlane.f32.xlu0 %v3124_v20 }
 0x47d   :  { %v1559_v23 = vpop.xlane.xlu1 %1558 }
 0x47e   :  { %2632 = vrcp.f32 %v1559_v23 }
 0x481   :  { %v1561_v24 = vpop.xlane.xlu1 %1560 }
 0x482   :  { %2634 = vrcp.f32 %v1561_v24 }
 0x485   :  { %v1905_v25 = vpop.xlane.xlu1 %1904  ;;  %v1913_v26 = vpop.xlane.xlu0 %1912 }
 0x486   :  { %v1907_v29 = vsub.f32 %v3081_v11, %v1905_v25  ;;  %2636 = vrcp.f32 %v1913_v26 }
 0x488   :  { %v2633_v30 = vpop.eup %2632  ;;  %v1910_v32 = vmul.f32 1.442695, %v1907_v29 }
 0x489   :  { %v1925_v33 = vpop.xlane.xlu1 %1924  ;;  %v1933_v34 = vpop.xlane.xlu0 %1932  ;;  %v1564_v35 = vmul.f32 %v2633_v30, %v2619_v61 }
 0x48a   :  { %2638 = vpow2.f32 %v1910_v32  ;;  %v1927_v36 = vsub.f32 %v3091_v27, %v1925_v33 }
 0x48b   :  { %2640 = vrcp.f32 %v1933_v34  ;;  %2004 = vst [vmem:[#allocation14 + $0x30] sm:$0xff] %v1564_v35 }
 0x48c   :  { %v2635_v37 = vpop.eup %2634  ;;  %v1930_v38 = vmul.f32 1.442695, %v1927_v36 }
 0x48d   :  { %v1945_v39 = vpop.xlane.xlu1 %1944  ;;  %v1953_v40 = vpop.xlane.xlu0 %1952  ;;  %v1565_v41 = vmul.f32 %v2635_v37, %v3103_v1 }
 0x48e   :  { %2642 = vpow2.f32 %v1930_v38  ;;  %v1947_v11 = vsub.f32 %v3095_v31, %v1945_v39  ;;  %v944_v38 = vsub.s32 1, %v3062_v56  ;;  %v2617_v56 = vld [vmem:[#allocation13 + $0x38] sm:$0xff]  }
 0x48f   :  { %2644 = vrcp.f32 %v1953_v40  ;;  %v1566_v42 = vpack.c.bf16 %v1565_v41, %v1564_v35  ;;  %2005 = vst [vmem:[#allocation14 + $0x68] sm:$0xff] %v1565_v41 }
 0x490   :  { %v2637_v43 = vpop.eup %2636  ;;  %v1950_v44 = vmul.f32 1.442695, %v1947_v11  ;;  %v945_v39 = vrot.slane %v3068_v58, %v944_v38  ;;  %v2172_v58 = vld [vmem:[%s3209_s9] ss:$0 sm:$0xff]  ;;  %s2820_s9 = scalar_lea.vmem %s2012_s24, 1792 }
 0x491   :  { %v1918_v45 = vmul.f32 %v2637_v43, %v3106_v6  ;;  %2380 = vmatmul.mubr.bf16.vlgmr.msra.gmra.mrb[16].mxu1 %v1566_v42  ;;  %v1965_v27 = vpop.xlane.xlu1 %1964  ;;  %v1973_v46 = vpop.xlane.xlu0 %1972  ;;  %v2605_v6 = vld [vmem:[#allocation11 + $0x18] sm:$0xff]   ;;  %p2821_p0 = scmp.ne.s32.totalorder %s2012_s24, %s2820_s9  ;;  %p2826_p2 = scmp.lt.s32.totalorder %s2820_s9, %s2820_s9 }
 0x492   :  { %2646 = vpow2.f32 %v1950_v44  ;;  %v1967_v47 = vsub.f32 %v3093_v28, %v1965_v27  ;;  %2419 = vmatprep.mubr.msk.bf16.mxu1 %vm2867_vm0, %v2866_v50  ;;  %2390 = vmatpush3.bf16.msra.mxu0 %v2605_v6  ;;  %v1298_v40 = vadd.f32 %v3074_v2, %v945_v39  ;;  %v1302_v41 = vadd.f32 %v3079_v9, %v945_v39 }
 0x493   :  { %1920 = vst [vmem:[#allocation14] sm:$0xff] %v1918_v45  ;;  %2648 = vrcp.f32 %v1973_v46  ;;  %2391 = vmatprep.subr.bf16.mxu0 %v2866_v50  ;;  %2404 = vmatpush3.bf16.msra.mxu1 %v2610_v14  ;;  %p2827_p3 = por %p2826_p2, %p2825_p1 }
 0x494   :  { %v3139_v48 = vpop.eup %2638  ;;  %v1970_v31 = vmul.f32 1.442695, %v1967_v47  ;;  %2405 = vmatprep.subr.bf16.mxu1 %v2866_v50  ;;  %v1433_v11 = vmax.f32 %v1298_v40, 0.0  ;;  %v1434_v43 = vmax.f32 %v1302_v41, 0.0 }
 0x495   :  { %v2641_v49 = vpop.eup %2640  ;;  %1914 = vadd.xlane.f32.xlu1 %v3139_v48  ;;  %v1985_v51 = vpop.xlane.xlu1 %1984  ;;  %p2828_p4 = pnand %p2827_p3, %p2821_p0 }
 0x496   :  { %v1993_v52 = vpop.xlane.xlu0 %1992  ;;  %v1938_v53 = vmul.f32 %v2641_v49, %v3110_v13  ;;  %2650 = vpow2.f32 %v1970_v31  ;;  %v1987_v54 = vsub.f32 %v3077_v8, %v1985_v51  ;;  %2392 = vmatpush3.bf16.msra.mxu0 %v2606_v7  ;;  %v2609_v13 = vld [vmem:[#allocation11 + $0x38] sm:$0xff]   ;;  %v2616_v31 = vld [vmem:[#allocation13 + $0x30] sm:$0xff]  }
 0x497   :  { %2652 = vrcp.f32 %v1993_v52  ;;  %2393 = vmatprep.subr.bf16.mxu0 %v2866_v50  ;;  %2406 = vmatpush3.bf16.msra.mxu1 %v2611_v15 }
 0x498   :  { %v3144_v28 = vpop.eup %2642  ;;  %1940 = vst [vmem:[#allocation14 + $0x8] sm:$0xff] %v1938_v53  ;;  %v1990_v55 = vmul.f32 1.442695, %v1987_v54  ;;  %2407 = vmatprep.subr.bf16.mxu1 %v2866_v50 }
 0x499   :  { %v2645_v57 = vpop.eup %2644  ;;  %1934 = vadd.xlane.f32.xlu1 %v3144_v28 }
 0x49a   :  { %v1958_v59 = vmul.f32 %v2645_v57, %v3114_v16  ;;  %2654 = vpow2.f32 %v1990_v55  ;;  %2394 = vmatpush3.bf16.msra.mxu0 %v2607_v10  ;;  %v2612_v16 = vld [vmem:[#allocation13 + $0x10] sm:$0xff]  }
 0x49b   :  { %2395 = vmatprep.subr.bf16.mxu0 %v2866_v50  ;;  %2408 = vmatpush3.bf16.msra.mxu1 %v2612_v16 }
 0x49c   :  { %v3148_v60 = vpop.eup %2646  ;;  %1960 = vst [vmem:[#allocation14 + $0x10] sm:$0xff] %v1958_v59  ;;  %2409 = vmatprep.subr.bf16.mxu1 %v2866_v50 }
 0x49d   :  { %v2649_v61 = vpop.eup %2648  ;;  %1954 = vadd.xlane.f32.xlu1 %v3148_v60 }
 0x49e   :  { %v1978_v62 = vmul.f32 %v2649_v61, %v3119_v18  ;;  %2396 = vmatpush3.bf16.msra.mxu0 %v2608_v12  ;;  %v2614_v18 = vld [vmem:[#allocation13 + $0x20] sm:$0xff]  }
 0x49f   :  { %2397 = vmatprep.subr.bf16.mxu0 %v2866_v50  ;;  %2410 = vmatpush3.bf16.msra.mxu1 %v2613_v17 }
 0x4a0   :  { %v3152_v8 = vpop.eup %2650  ;;  %1980 = vst [vmem:[#allocation14 + $0x18] sm:$0xff] %v1978_v62  ;;  %2411 = vmatprep.subr.bf16.mxu1 %v2866_v50 }
 0x4a1   :  { %v2653_v63 = vpop.eup %2652  ;;  %1974 = vadd.xlane.f32.xlu1 %v3152_v8 }
 0x4a2   :  { %v1998_v0 = vmul.f32 %v2653_v63, %v3124_v20  ;;  %2398 = vmatpush3.bf16.msra.mxu0 %v2609_v13 }
 0x4a3   :  { %2412 = vmatpush3.bf16.msra.mxu1 %v2614_v18 }
 0x4a4   :  { %v3156_v1 = vpop.eup %2654  ;;  %2000 = vst [vmem:[#allocation14 + $0x20] sm:$0xff] %v1998_v0  ;;  %2413 = vmatprep.subr.bf16.mxu1 %v2866_v50 }
 0x4a5   :  { %1994 = vadd.xlane.f32.xlu1 %v3156_v1 }
 0x4a7   :  { %2414 = vmatpush3.bf16.msra.mxu1 %v2615_v19 }
 0x4a8   :  { %2415 = vmatprep.subr.bf16.mxu1 %v2866_v50 }
 0x4ab   :  { %2416 = vmatpush3.bf16.msra.mxu1 %v2616_v31 }
 0x4ac   :  { %2417 = vmatprep.subr.bf16.mxu1 %v2866_v50  ;;  %v2181_v50 = vld [vmem:[%s3211_s11] ss:$0 sm:$0xff] }
 0x4af   :  { %2418 = vmatpush3.bf16.msra.mxu1 %v2617_v56 }
 0x522   :  { %v1915_v20 = vpop.xlane.xlu1 %1914 }
 0x523   :  { %2656 = vrcp.f32 %v1915_v20 }
 0x526   :  { %v1935_v21 = vpop.xlane.xlu1 %1934 }
 0x527   :  { %2658 = vrcp.f32 %v1935_v21 }
 0x52a   :  { %v1955_v22 = vpop.xlane.xlu1 %1954 }
 0x52b   :  { %2660 = vrcp.f32 %v1955_v22 }
 0x52d   :  { %v2657_v23 = vpop.eup %2656 }
 0x52e   :  { %v1919_v24 = vmul.f32 %v2657_v23, %v3139_v48  ;;  %v1975_v25 = vpop.xlane.xlu1 %1974 }
 0x52f   :  { %2662 = vrcp.f32 %v1975_v25 }
 0x530   :  { %1921 = vst [vmem:[#allocation14 + $0x38] sm:$0xff] %v1919_v24 }
 0x531   :  { %v2659_v26 = vpop.eup %2658 }
 0x532   :  { %v1939_v29 = vmul.f32 %v2659_v26, %v3144_v28  ;;  %v1995_v30 = vpop.xlane.xlu1 %1994 }
 0x533   :  { %2664 = vrcp.f32 %v1995_v30 }
 0x534   :  { %1941 = vst [vmem:[#allocation14 + $0x40] sm:$0xff] %v1939_v29 }
 0x535   :  { %v2661_v32 = vpop.eup %2660 }
 0x536   :  { %v1959_v33 = vmul.f32 %v2661_v32, %v3148_v60 }
 0x538   :  { %1961 = vst [vmem:[#allocation14 + $0x48] sm:$0xff] %v1959_v33 }
 0x539   :  { %v2663_v34 = vpop.eup %2662 }
 0x53a   :  { %v1979_v35 = vmul.f32 %v2663_v34, %v3152_v8 }
 0x53c   :  { %1981 = vst [vmem:[#allocation14 + $0x50] sm:$0xff] %v1979_v35 }
 0x53d   :  { %v2665_v36 = vpop.eup %2664 }
 0x53e   :  { %v1999_v37 = vmul.f32 %v2665_v36, %v3156_v1 }
 0x540   :  { %2001 = vst [vmem:[#allocation14 + $0x58] sm:$0xff] %v1999_v37 }
 0x564   :  { %v1665_v42 = vpop.f32.mrb[16].mxu1 }
 0x565   :  { %v1672_v44 = vmul.f32 %v1665_v42, %v1433_v11  ;;  %v2381_v45 = vpop.f32.mrb[17].mxu1 }
 0x566   :  { %v1668_v27 = vpop.f32.mrb[18].mxu1 }
 0x567   :  { %v1673_v46 = vmul.f32 %v1668_v27, %v1434_v43  ;;  %v2382_v47 = vpop.f32.mrb[19].mxu1 }
 0x569   :  { %v1674_v48 = vpack.c.bf16 %v1673_v46, %v1672_v44 }
 0x56b   :  { %2400 = vmatmul.mubr.bf16.vlgmr.msra.gmra.mrb[20].mxu0 %v1674_v48 }
 0x63e   :  { %v1780_v2 = vpop.f32.mrb[20].mxu0 }
 0x63f   :  { %v1781_v9 = vadd.f32 %v2172_v58, %v1780_v2  ;;  %v2401_v49 = vpop.f32.mrb[21].mxu0 }
 0x640   :  { %v1783_v51 = vpop.f32.mrb[22].mxu0 }
 0x641   :  { %v1784_v52 = vadd.f32 %v2172_v58, %v1783_v51  ;;  %v2402_v53 = vpop.f32.mrb[23].mxu0  ;;  %v1787_v54 = vmax.f32 %v1781_v9, 0.0 }
 0x643   :  { %v1788_v28 = vmax.f32 %v1784_v52, 0.0 }
 0x645   :  { %v1789_v55 = vpack.c.bf16 %v1788_v28, %v1787_v54 }
 0x647   :  { %2420 = vmatmul.mubr.bf16.vlgmr.msra.gmra.mrb[20].mxu1 %v1789_v55 }
 0x71a   :  { %v1895_v57 = vpop.f32.mrb[20].mxu1 }
 0x71b   :  { %v1896_v59 = vadd.f32 %v2181_v50, %v1895_v57  ;;  %v2421_v60 = vpop.f32.mrb[21].mxu1 }
 0x71c   :  { %v1898_v61 = vpop.f32.mrb[22].mxu1 }
 0x71d   :  { %2002 = vst [vmem:[#allocation14 + $0x28] sm:$0xff] %v1896_v59  ;;  %v1899_v62 = vadd.f32 %v2181_v50, %v1898_v61  ;;  %v2422_v8 = vpop.f32.mrb[23].mxu1 }
 0x71f   :  { %2003 = vst [vmem:[#allocation14 + $0x60] sm:$0xff] %v1899_v62 }
 0x720   :  { %2831 = shalt.err (!%p2828_p4)
}
 0x721   :  { %s2832_s18 = scalar_lea.hbm %s3212_s12, 1792 }
 0x722   :  { %p2833_p5 = scmp.ne.s32.totalorder %s3212_s12, %s2832_s18  ;;  %p2836_p6 = scmp.lt.u32.totalorder %s2832_s18, %s3212_s12 }
 0x724   :  { %p2838_p7 = pnand %p2836_p6, %p2833_p5 }
 0x726   :  { %2841 = shalt.err (!%p2838_p7)
}
 0x727   :  { %s2869_s28 = smov 896   ;;  %s2870_s1 = smov 56  }
 0x728   :  { %2017 = dma.vmem_to_hbm [thread:$0]  %s2012_s24, 1792, %s3212_s12, [#allocation4], %s2869_s28, %s2869_s28, %s2870_s1  }
 0x729   :  { %2850 = dma.done.wait [#allocation4], 1792  }
 0x72a   :  { %2851 = vsyncadd [#allocation4], 4294965504 }
 0x72b   :  { %2021 = vsyncpa [#allocation3], 1 }
 0x72c   :  { %2022 = vsyncpa [#allocation6], 1 }
 0x72d   :  { %2023 = vsyncpa [#allocation9], 1 }
 0x72e   :  { %2024 = vsyncpa [#allocation12], 1 }
 0x72f   :  { %2025 = vsyncpa [#allocation4], 1 }

</bundles_post_ra>
